<compile_context>
chip_gen: v7x
topology: tpu7x:2x2x1
jax: 0.10.0
libtpu: 0.0.40
codegen_flags: <defaults>
</compile_context>

<pallas_src>
import functools

import jax
import jax.numpy as jnp
from jax import lax
from jax.experimental import pallas as pl
from jax.experimental.pallas import tpu as pltpu


_VMEM_SPEC = pl.BlockSpec(memory_space=pltpu.MemorySpace.VMEM)
_SUBLANES = 8  # f32 sublane granularity of a vreg (same on v5e / v6e / v7x)


def _sigmoid(x):
    # sigmoid(x) = 0.5 * (1 + tanh(x/2)): one EUP push instead of exp + reciprocal.
    # (Biggest help on v5e where the single EUP slot saturates first.)
    return 0.5 * (jnp.tanh(0.5 * x) + 1.0)


# ----------------------------------------------------------------------------
# Single fused Pallas kernel: all LSTM layers + FC head in one pallas_call.
# ----------------------------------------------------------------------------
def _make_fused_kernel(n_layers, seq_len):
    """Builds the fused forward kernel.

    Ref layout (all VMEM-resident; Bp = batch padded to a multiple of 8):
      x_ref:      (T*Bp, Din)  time-major-flattened input (row = t*Bp + b)
      h0_ref:     (L, Bp, H)   initial hidden states
      c0_ref:     (L, Bp, H)   initial cell states
      per layer l: wih_t (Din_l, 4H), whh_t (H, 4H), bias (1, 4H)  [= b_ih + b_hh]
      head:       w1t (H, F), b1 (1, F), w2t (F, Dout), b2 (1, Dout)
      y_ref:      (Bp, Dout)   output (padded rows sliced off in the wrapper)
      gates_ref:  (T*Bp, 4H)   scratch: hoisted input projection for the current layer
      seq_ref:    (T*Bp, H)    scratch: inter-layer hidden sequence (never leaves HBM)
    """

    def kernel(x_ref, h0_ref, c0_ref, *refs):
        lstm_refs = refs[: 3 * n_layers]
        (w1t_ref, b1_ref, w2t_ref, b2_ref,
         y_ref, gates_ref, seq_ref) = refs[3 * n_layers:]

        Bp = h0_ref.shape[1]          # sublane-padded batch (multiple of 8)
        H = h0_ref.shape[2]
        T = seq_len

        h_last = None
        for layer in range(n_layers):
            wih_t_ref, whh_t_ref, b_ref = lstm_refs[3 * layer: 3 * layer + 3]

            # Hoisted input projection: ONE (T*Bp, Din) @ (Din, 4H) matmul per layer
            # (fills MXU rows) plus a single broadcast bias add, instead of T tiny
            # per-step matmuls / per-step bias broadcasts inside the recurrence.
            xin = x_ref[...] if layer == 0 else seq_ref[...]
            gates_ref[...] = (
                jnp.dot(xin, wih_t_ref[...], preferred_element_type=jnp.float32)
                + b_ref[...]
            )

            whh_t = whh_t_ref[...]          # hoisted weight load
            write_seq = layer < n_layers - 1

            h = h0_ref[layer]
            c = c0_ref[layer]
            # Short static trip count -> fully unrolled recurrence. Row offsets
            # t*Bp are static AND 8-aligned (Bp % 8 == 0), so every per-step
            # load/store is an unmasked full-sublane-tile access.
            for t in range(T):
                row = t * Bp
                g = gates_ref[pl.ds(row, Bp), :] + jnp.dot(
                    h, whh_t, preferred_element_type=jnp.float32
                )
                i_g = _sigmoid(g[:, 0 * H: 1 * H])
                f_g = _sigmoid(g[:, 1 * H: 2 * H])
                g_g = jnp.tanh(g[:, 2 * H: 3 * H])
                o_g = _sigmoid(g[:, 3 * H: 4 * H])
                c = f_g * c + i_g * g_g
                h = o_g * jnp.tanh(c)
                if write_seq:
                    # Only intermediate layers need the full sequence; the last layer
                    # only needs its final hidden state for the head.
                    seq_ref[pl.ds(row, Bp), :] = h
            h_last = h
            # TODO(synk): inter-layer LSTM dropout is train-only; identity in eval mode.

        # Head: fc1 -> dropout(identity, eval) -> tanh -> fc2, fused in-kernel.
        # TODO(synk): nn.Dropout after fc1 is train-only; eval-mode identity used.
        hid = jnp.tanh(
            jnp.dot(h_last, w1t_ref[...], preferred_element_type=jnp.float32)
            + b1_ref[...]
        )
        y_ref[...] = (
            jnp.dot(hid, w2t_ref[...], preferred_element_type=jnp.float32)
            + b2_ref[...]
        )

    return kernel


# ----------------------------------------------------------------------------
# Wrappers (plain-JAX glue around the single pallas_call)
# ----------------------------------------------------------------------------
def prepare_params(params, n_layers):
    """One-time weight prep (transposes + bias fusion) outside the per-call path."""
    prepped = {"lstm": []}
    for layer in range(n_layers):
        w_ih, w_hh, b_ih, b_hh = params["lstm"][layer]
        four_h = w_ih.shape[0]
        prepped["lstm"].append((
            jnp.transpose(w_ih),                  # (Din, 4H)
            jnp.transpose(w_hh),                  # (H, 4H)
            (b_ih + b_hh).reshape(1, four_h),     # (1, 4H)
        ))
    prepped["fc1_wt"] = jnp.transpose(params["fc1_w"])   # (H, F)
    prepped["fc1_b"] = params["fc1_b"].reshape(1, -1)
    prepped["fc2_wt"] = jnp.transpose(params["fc2_w"])   # (F, Dout)
    prepped["fc2_b"] = params["fc2_b"].reshape(1, -1)
    return prepped


@functools.partial(jax.jit, static_argnames=("n_layers",))
def lstm_mse_forward(input_data, hidden, prepped, *, n_layers):
    """Pallas implementation of LstmMse.forward (eval-mode dropout)."""
    h0, c0 = hidden
    B, T, Din = input_data.shape
    H = h0.shape[-1]
    Dout = prepped["fc2_wt"].shape[1]

    # Pad batch up to the f32 sublane granularity (8): every per-step (Bp, .)
    # slab in-kernel becomes an aligned, unmasked sublane tile, and the per-step
    # MXU LHS uses all 8 rows of a vreg.  Padded rows are dead compute below the
    # hardware vreg granularity (free) and are sliced off below.
    Bp = max(_SUBLANES, ((B + _SUBLANES - 1) // _SUBLANES) * _SUBLANES)
    pad_b = Bp - B
    x_p = jnp.pad(input_data, ((0, pad_b), (0, 0), (0, 0)))
    h0_p = jnp.pad(h0, ((0, 0), (0, pad_b), (0, 0)))
    c0_p = jnp.pad(c0, ((0, 0), (0, pad_b), (0, 0)))

    # Time-major + flattened so every per-step access in-kernel is a contiguous
    # (Bp, .) slab; row index = t*Bp + b.  This is a tiny XLA transpose per call.
    x_tm = jnp.transpose(x_p, (1, 0, 2)).reshape(T * Bp, Din)

    flat_w = []
    for layer in range(n_layers):
        flat_w.extend(prepped["lstm"][layer])
    flat_w.extend([prepped["fc1_wt"], prepped["fc1_b"],
                   prepped["fc2_wt"], prepped["fc2_b"]])

    # Single fused pallas_call: all LSTM layers and the FC head run in one kernel,
    # so the inter-layer (T, Bp, H) sequence never touches HBM.
    # TODO(synk): for large B on v7x, add a batch-tiled grid with
    #             dimension_semantics=("parallel",) (2 TensorCores) and tile T to
    #             respect its 64 MiB VMEM; unnecessary at these shapes.
    y_hat = pl.pallas_call(
        _make_fused_kernel(n_layers, T),
        out_shape=jax.ShapeDtypeStruct((Bp, Dout), jnp.float32),
        in_specs=[_VMEM_SPEC] * (3 + len(flat_w)),
        out_specs=_VMEM_SPEC,
        scratch_shapes=[
            pltpu.VMEM((T * Bp, 4 * H), jnp.float32),   # hoisted input projection
            pltpu.VMEM((T * Bp, H), jnp.float32),       # inter-layer sequence
        ],
    )(x_tm, h0_p, c0_p, *flat_w)
    return y_hat[:B]


# ----------------------------------------------------------------------------
# Pure-JAX reference for correctness check
# ----------------------------------------------------------------------------
def _ref_forward(x, hidden, params, n_layers):
    h_all, c_all = hidden
    seq = x
    for layer in range(n_layers):
        w_ih, w_hh, b_ih, b_hh = params["lstm"][layer]

        def step(carry, xt):
            h, c = carry
            gates = xt @ w_ih.T + h @ w_hh.T + b_ih + b_hh
            i, f, g, o = jnp.split(gates, 4, axis=-1)
            i = jax.nn.sigmoid(i)
            f = jax.nn.sigmoid(f)
            g = jnp.tanh(g)
            o = jax.nn.sigmoid(o)
            c = f * c + i * g
            h = o * jnp.tanh(c)
            return (h, c), h

        _, ys = lax.scan(step, (h_all[layer], c_all[layer]), jnp.swapaxes(seq, 0, 1))
        seq = jnp.swapaxes(ys, 0, 1)
    last = seq[:, -1, :]
    out = jnp.tanh(last @ params["fc1_w"].T + params["fc1_b"])
    return out @ params["fc2_w"].T + params["fc2_b"]


# ----------------------------------------------------------------------------
# Main
# ----------------------------------------------------------------------------
if __name__ == "__main__":
    batch_size = 2
    seq_len = 8
    input_dim = 8
    n_hidden_lstm = 32
    n_layers = 2
    n_hidden_fc = 16

    key = jax.random.PRNGKey(0)
    keys = iter(jax.random.split(key, 64))

    def init(shape, scale=0.1):
        return scale * jax.random.normal(next(keys), shape, dtype=jnp.float32)

    params = {"lstm": []}
    for layer in range(n_layers):
        d_in = input_dim if layer == 0 else n_hidden_lstm
        params["lstm"].append((
            init((4 * n_hidden_lstm, d_in)),           # w_ih
            init((4 * n_hidden_lstm, n_hidden_lstm)),  # w_hh
            init((4 * n_hidden_lstm,)),                # b_ih
            init((4 * n_hidden_lstm,)),                # b_hh
        ))
    params["fc1_w"] = init((n_hidden_fc, n_hidden_lstm))
    params["fc1_b"] = init((n_hidden_fc,))
    params["fc2_w"] = init((input_dim, n_hidden_fc))
    params["fc2_b"] = init((input_dim,))

    x = jax.random.normal(next(keys), (batch_size, seq_len, input_dim), dtype=jnp.float32)
    h0 = jnp.zeros((n_layers, batch_size, n_hidden_lstm), dtype=jnp.float32)
    c0 = jnp.zeros((n_layers, batch_size, n_hidden_lstm), dtype=jnp.float32)

    prepped = prepare_params(params, n_layers)

    y_hat = lstm_mse_forward(x, (h0, c0), prepped, n_layers=n_layers)
    jax.block_until_ready(y_hat)

    y_ref = _ref_forward(x, (h0, c0), params, n_layers)
    assert y_hat.shape == y_ref.shape, "shape mismatch"
    assert jnp.allclose(y_hat, y_ref, atol=1e-4, rtol=1e-4), "y_hat mismatch"

    print("KERNEL_OK")
</pallas_src>

<mosaic_0001>
module attributes {stable_mosaic.version = 11 : i64} {
  func.func @kernel(%arg0: memref<64x8xf32, #tpu.memory_space<vmem>>, %arg1: memref<2x8x32xf32, #tpu.memory_space<vmem>>, %arg2: memref<2x8x32xf32, #tpu.memory_space<vmem>>, %arg3: memref<8x128xf32, #tpu.memory_space<vmem>>, %arg4: memref<32x128xf32, #tpu.memory_space<vmem>>, %arg5: memref<1x128xf32, #tpu.memory_space<vmem>>, %arg6: memref<32x128xf32, #tpu.memory_space<vmem>>, %arg7: memref<32x128xf32, #tpu.memory_space<vmem>>, %arg8: memref<1x128xf32, #tpu.memory_space<vmem>>, %arg9: memref<32x16xf32, #tpu.memory_space<vmem>>, %arg10: memref<1x16xf32, #tpu.memory_space<vmem>>, %arg11: memref<16x8xf32, #tpu.memory_space<vmem>>, %arg12: memref<1x8xf32, #tpu.memory_space<vmem>>, %arg13: memref<8x8xf32, #tpu.memory_space<vmem>>, %arg14: memref<64x128xf32, #tpu.memory_space<vmem>>, %arg15: memref<64x32xf32, #tpu.memory_space<vmem>>) attributes {dimension_semantics = [], scalar_prefetch = 0 : i64, scratch_operands = 2 : i64, tpu.core_type = #tpu.core_type<tc>} {
    %c0 = arith.constant 0 : index
    %c0_0 = arith.constant 0 : index
    %0 = vector.load %arg0[%c0, %c0_0] : memref<64x8xf32, #tpu.memory_space<vmem>>, vector<64x8xf32>
    %c0_1 = arith.constant 0 : index
    %c0_2 = arith.constant 0 : index
    %1 = vector.load %arg3[%c0_1, %c0_2] : memref<8x128xf32, #tpu.memory_space<vmem>>, vector<8x128xf32>
    %cst = arith.constant dense<0.000000e+00> : vector<64x128xf32>
    %2 = tpu.matmul %0, %1, %cst {dimension_numbers = #tpu.dot_dimension_numbers<[1], [0], [0], [1], [0, 0, 1, 1], [], []>} : vector<64x8xf32>, vector<8x128xf32>, vector<64x128xf32> -> vector<64x128xf32>
    %c0_3 = arith.constant 0 : index
    %c0_4 = arith.constant 0 : index
    %3 = vector.load %arg5[%c0_3, %c0_4] : memref<1x128xf32, #tpu.memory_space<vmem>>, vector<1x128xf32>
    %4 = vector.broadcast %3 : vector<1x128xf32> to vector<64x128xf32>
    %5 = arith.addf %2, %4 : vector<64x128xf32>
    %c0_5 = arith.constant 0 : index
    %c0_6 = arith.constant 0 : index
    %6 = vector.load %arg14[%c0_5, %c0_6] : memref<64x128xf32, #tpu.memory_space<vmem>>, vector<64x128xf32>
    tpu.vector_store %arg14[%c0_5, %c0_6], %5 {strides = array<i32>} : memref<64x128xf32, #tpu.memory_space<vmem>>, vector<64x128xf32>,
    %c0_7 = arith.constant 0 : index
    %c0_8 = arith.constant 0 : index
    %7 = vector.load %arg4[%c0_7, %c0_8] : memref<32x128xf32, #tpu.memory_space<vmem>>, vector<32x128xf32>
    %c0_9 = arith.constant 0 : index
    %c0_10 = arith.constant 0 : index
    %c0_11 = arith.constant 0 : index
    %8 = vector.load %arg1[%c0_9, %c0_10, %c0_11] : memref<2x8x32xf32, #tpu.memory_space<vmem>>, vector<1x8x32xf32>
    %9 = vector.shape_cast %8 : vector<1x8x32xf32> to vector<8x32xf32>
    %c0_12 = arith.constant 0 : index
    %c0_13 = arith.constant 0 : index
    %c0_14 = arith.constant 0 : index
    %10 = vector.load %arg2[%c0_12, %c0_13, %c0_14] : memref<2x8x32xf32, #tpu.memory_space<vmem>>, vector<1x8x32xf32>
    %11 = vector.shape_cast %10 : vector<1x8x32xf32> to vector<8x32xf32>
    %c0_15 = arith.constant 0 : index
    %c0_16 = arith.constant 0 : index
    %12 = vector.load %arg14[%c0_15, %c0_16] : memref<64x128xf32, #tpu.memory_space<vmem>>, vector<8x128xf32>
    %cst_17 = arith.constant dense<0.000000e+00> : vector<8x128xf32>
    %13 = tpu.matmul %9, %7, %cst_17 {dimension_numbers = #tpu.dot_dimension_numbers<[1], [0], [0], [1], [0, 0, 1, 1], [], []>} : vector<8x32xf32>, vector<32x128xf32>, vector<8x128xf32> -> vector<8x128xf32>
    %14 = arith.addf %12, %13 : vector<8x128xf32>
    %15 = vector.extract_strided_slice %14 {offsets = [0, 0], sizes = [8, 32], strides = [1, 1]} : vector<8x128xf32> to vector<8x32xf32>
    %cst_18 = arith.constant 5.000000e-01 : f32
    %16 = vector.broadcast %cst_18 : f32 to vector<8x32xf32>
    %17 = arith.mulf %16, %15 : vector<8x32xf32>
    %18 = math.tanh %17 : vector<8x32xf32>
    %cst_19 = arith.constant 1.000000e+00 : f32
    %19 = vector.broadcast %cst_19 : f32 to vector<8x32xf32>
    %20 = arith.addf %18, %19 : vector<8x32xf32>
    %cst_20 = arith.constant 5.000000e-01 : f32
    %21 = vector.broadcast %cst_20 : f32 to vector<8x32xf32>
    %22 = arith.mulf %21, %20 : vector<8x32xf32>
    %23 = vector.extract_strided_slice %14 {offsets = [0, 32], sizes = [8, 32], strides = [1, 1]} : vector<8x128xf32> to vector<8x32xf32>
    %cst_21 = arith.constant 5.000000e-01 : f32
    %24 = vector.broadcast %cst_21 : f32 to vector<8x32xf32>
    %25 = arith.mulf %24, %23 : vector<8x32xf32>
    %26 = math.tanh %25 : vector<8x32xf32>
    %cst_22 = arith.constant 1.000000e+00 : f32
    %27 = vector.broadcast %cst_22 : f32 to vector<8x32xf32>
    %28 = arith.addf %26, %27 : vector<8x32xf32>
    %cst_23 = arith.constant 5.000000e-01 : f32
    %29 = vector.broadcast %cst_23 : f32 to vector<8x32xf32>
    %30 = arith.mulf %29, %28 : vector<8x32xf32>
    %31 = vector.extract_strided_slice %14 {offsets = [0, 64], sizes = [8, 32], strides = [1, 1]} : vector<8x128xf32> to vector<8x32xf32>
    %32 = math.tanh %31 : vector<8x32xf32>
    %33 = vector.extract_strided_slice %14 {offsets = [0, 96], sizes = [8, 32], strides = [1, 1]} : vector<8x128xf32> to vector<8x32xf32>
    %cst_24 = arith.constant 5.000000e-01 : f32
    %34 = vector.broadcast %cst_24 : f32 to vector<8x32xf32>
    %35 = arith.mulf %34, %33 : vector<8x32xf32>
    %36 = math.tanh %35 : vector<8x32xf32>
    %cst_25 = arith.constant 1.000000e+00 : f32
    %37 = vector.broadcast %cst_25 : f32 to vector<8x32xf32>
    %38 = arith.addf %36, %37 : vector<8x32xf32>
    %cst_26 = arith.constant 5.000000e-01 : f32
    %39 = vector.broadcast %cst_26 : f32 to vector<8x32xf32>
    %40 = arith.mulf %39, %38 : vector<8x32xf32>
    %41 = arith.mulf %30, %11 : vector<8x32xf32>
    %42 = arith.mulf %22, %32 : vector<8x32xf32>
    %43 = arith.addf %41, %42 : vector<8x32xf32>
    %44 = math.tanh %43 : vector<8x32xf32>
    %45 = arith.mulf %40, %44 : vector<8x32xf32>
    %c0_27 = arith.constant 0 : index
    %c0_28 = arith.constant 0 : index
    %46 = vector.load %arg15[%c0_27, %c0_28] : memref<64x32xf32, #tpu.memory_space<vmem>>, vector<8x32xf32>
    tpu.vector_store %arg15[%c0_27, %c0_28], %45 {strides = array<i32>} : memref<64x32xf32, #tpu.memory_space<vmem>>, vector<8x32xf32>,
    %c8 = arith.constant 8 : index
    %c0_29 = arith.constant 0 : index
    %47 = vector.load %arg14[%c8, %c0_29] : memref<64x128xf32, #tpu.memory_space<vmem>>, vector<8x128xf32>
    %cst_30 = arith.constant dense<0.000000e+00> : vector<8x128xf32>
    %48 = tpu.matmul %45, %7, %cst_30 {dimension_numbers = #tpu.dot_dimension_numbers<[1], [0], [0], [1], [0, 0, 1, 1], [], []>} : vector<8x32xf32>, vector<32x128xf32>, vector<8x128xf32> -> vector<8x128xf32>
    %49 = arith.addf %47, %48 : vector<8x128xf32>
    %50 = vector.extract_strided_slice %49 {offsets = [0, 0], sizes = [8, 32], strides = [1, 1]} : vector<8x128xf32> to vector<8x32xf32>
    %cst_31 = arith.constant 5.000000e-01 : f32
    %51 = vector.broadcast %cst_31 : f32 to vector<8x32xf32>
    %52 = arith.mulf %51, %50 : vector<8x32xf32>
    %53 = math.tanh %52 : vector<8x32xf32>
    %cst_32 = arith.constant 1.000000e+00 : f32
    %54 = vector.broadcast %cst_32 : f32 to vector<8x32xf32>
    %55 = arith.addf %53, %54 : vector<8x32xf32>
    %cst_33 = arith.constant 5.000000e-01 : f32
    %56 = vector.broadcast %cst_33 : f32 to vector<8x32xf32>
    %57 = arith.mulf %56, %55 : vector<8x32xf32>
    %58 = vector.extract_strided_slice %49 {offsets = [0, 32], sizes = [8, 32], strides = [1, 1]} : vector<8x128xf32> to vector<8x32xf32>
    %cst_34 = arith.constant 5.000000e-01 : f32
    %59 = vector.broadcast %cst_34 : f32 to vector<8x32xf32>
    %60 = arith.mulf %59, %58 : vector<8x32xf32>
    %61 = math.tanh %60 : vector<8x32xf32>
    %cst_35 = arith.constant 1.000000e+00 : f32
    %62 = vector.broadcast %cst_35 : f32 to vector<8x32xf32>
    %63 = arith.addf %61, %62 : vector<8x32xf32>
    %cst_36 = arith.constant 5.000000e-01 : f32
    %64 = vector.broadcast %cst_36 : f32 to vector<8x32xf32>
    %65 = arith.mulf %64, %63 : vector<8x32xf32>
    %66 = vector.extract_strided_slice %49 {offsets = [0, 64], sizes = [8, 32], strides = [1, 1]} : vector<8x128xf32> to vector<8x32xf32>
    %67 = math.tanh %66 : vector<8x32xf32>
    %68 = vector.extract_strided_slice %49 {offsets = [0, 96], sizes = [8, 32], strides = [1, 1]} : vector<8x128xf32> to vector<8x32xf32>
    %cst_37 = arith.constant 5.000000e-01 : f32
    %69 = vector.broadcast %cst_37 : f32 to vector<8x32xf32>
    %70 = arith.mulf %69, %68 : vector<8x32xf32>
    %71 = math.tanh %70 : vector<8x32xf32>
    %cst_38 = arith.constant 1.000000e+00 : f32
    %72 = vector.broadcast %cst_38 : f32 to vector<8x32xf32>
    %73 = arith.addf %71, %72 : vector<8x32xf32>
    %cst_39 = arith.constant 5.000000e-01 : f32
    %74 = vector.broadcast %cst_39 : f32 to vector<8x32xf32>
    %75 = arith.mulf %74, %73 : vector<8x32xf32>
    %76 = arith.mulf %65, %43 : vector<8x32xf32>
    %77 = arith.mulf %57, %67 : vector<8x32xf32>
    %78 = arith.addf %76, %77 : vector<8x32xf32>
    %79 = math.tanh %78 : vector<8x32xf32>
    %80 = arith.mulf %75, %79 : vector<8x32xf32>
    %c8_40 = arith.constant 8 : index
    %c0_41 = arith.constant 0 : index
    %81 = vector.load %arg15[%c8_40, %c0_41] : memref<64x32xf32, #tpu.memory_space<vmem>>, vector<8x32xf32>
    tpu.vector_store %arg15[%c8_40, %c0_41], %80 {strides = array<i32>} : memref<64x32xf32, #tpu.memory_space<vmem>>, vector<8x32xf32>,
    %c16 = arith.constant 16 : index
    %c0_42 = arith.constant 0 : index
    %82 = vector.load %arg14[%c16, %c0_42] : memref<64x128xf32, #tpu.memory_space<vmem>>, vector<8x128xf32>
    %cst_43 = arith.constant dense<0.000000e+00> : vector<8x128xf32>
    %83 = tpu.matmul %80, %7, %cst_43 {dimension_numbers = #tpu.dot_dimension_numbers<[1], [0], [0], [1], [0, 0, 1, 1], [], []>} : vector<8x32xf32>, vector<32x128xf32>, vector<8x128xf32> -> vector<8x128xf32>
    %84 = arith.addf %82, %83 : vector<8x128xf32>
    %85 = vector.extract_strided_slice %84 {offsets = [0, 0], sizes = [8, 32], strides = [1, 1]} : vector<8x128xf32> to vector<8x32xf32>
    %cst_44 = arith.constant 5.000000e-01 : f32
    %86 = vector.broadcast %cst_44 : f32 to vector<8x32xf32>
    %87 = arith.mulf %86, %85 : vector<8x32xf32>
    %88 = math.tanh %87 : vector<8x32xf32>
    %cst_45 = arith.constant 1.000000e+00 : f32
    %89 = vector.broadcast %cst_45 : f32 to vector<8x32xf32>
    %90 = arith.addf %88, %89 : vector<8x32xf32>
    %cst_46 = arith.constant 5.000000e-01 : f32
    %91 = vector.broadcast %cst_46 : f32 to vector<8x32xf32>
    %92 = arith.mulf %91, %90 : vector<8x32xf32>
    %93 = vector.extract_strided_slice %84 {offsets = [0, 32], sizes = [8, 32], strides = [1, 1]} : vector<8x128xf32> to vector<8x32xf32>
    %cst_47 = arith.constant 5.000000e-01 : f32
    %94 = vector.broadcast %cst_47 : f32 to vector<8x32xf32>
    %95 = arith.mulf %94, %93 : vector<8x32xf32>
    %96 = math.tanh %95 : vector<8x32xf32>
    %cst_48 = arith.constant 1.000000e+00 : f32
    %97 = vector.broadcast %cst_48 : f32 to vector<8x32xf32>
    %98 = arith.addf %96, %97 : vector<8x32xf32>
    %cst_49 = arith.constant 5.000000e-01 : f32
    %99 = vector.broadcast %cst_49 : f32 to vector<8x32xf32>
    %100 = arith.mulf %99, %98 : vector<8x32xf32>
    %101 = vector.extract_strided_slice %84 {offsets = [0, 64], sizes = [8, 32], strides = [1, 1]} : vector<8x128xf32> to vector<8x32xf32>
    %102 = math.tanh %101 : vector<8x32xf32>
    %103 = vector.extract_strided_slice %84 {offsets = [0, 96], sizes = [8, 32], strides = [1, 1]} : vector<8x128xf32> to vector<8x32xf32>
    %cst_50 = arith.constant 5.000000e-01 : f32
    %104 = vector.broadcast %cst_50 : f32 to vector<8x32xf32>
    %105 = arith.mulf %104, %103 : vector<8x32xf32>
    %106 = math.tanh %105 : vector<8x32xf32>
    %cst_51 = arith.constant 1.000000e+00 : f32
    %107 = vector.broadcast %cst_51 : f32 to vector<8x32xf32>
    %108 = arith.addf %106, %107 : vector<8x32xf32>
    %cst_52 = arith.constant 5.000000e-01 : f32
    %109 = vector.broadcast %cst_52 : f32 to vector<8x32xf32>
    %110 = arith.mulf %109, %108 : vector<8x32xf32>
    %111 = arith.mulf %100, %78 : vector<8x32xf32>
    %112 = arith.mulf %92, %102 : vector<8x32xf32>
    %113 = arith.addf %111, %112 : vector<8x32xf32>
    %114 = math.tanh %113 : vector<8x32xf32>
    %115 = arith.mulf %110, %114 : vector<8x32xf32>
    %c16_53 = arith.constant 16 : index
    %c0_54 = arith.constant 0 : index
    %116 = vector.load %arg15[%c16_53, %c0_54] : memref<64x32xf32, #tpu.memory_space<vmem>>, vector<8x32xf32>
    tpu.vector_store %arg15[%c16_53, %c0_54], %115 {strides = array<i32>} : memref<64x32xf32, #tpu.memory_space<vmem>>, vector<8x32xf32>,
    %c24 = arith.constant 24 : index
    %c0_55 = arith.constant 0 : index
    %117 = vector.load %arg14[%c24, %c0_55] : memref<64x128xf32, #tpu.memory_space<vmem>>, vector<8x128xf32>
    %cst_56 = arith.constant dense<0.000000e+00> : vector<8x128xf32>
    %118 = tpu.matmul %115, %7, %cst_56 {dimension_numbers = #tpu.dot_dimension_numbers<[1], [0], [0], [1], [0, 0, 1, 1], [], []>} : vector<8x32xf32>, vector<32x128xf32>, vector<8x128xf32> -> vector<8x128xf32>
    %119 = arith.addf %117, %118 : vector<8x128xf32>
    %120 = vector.extract_strided_slice %119 {offsets = [0, 0], sizes = [8, 32], strides = [1, 1]} : vector<8x128xf32> to vector<8x32xf32>
    %cst_57 = arith.constant 5.000000e-01 : f32
    %121 = vector.broadcast %cst_57 : f32 to vector<8x32xf32>
    %122 = arith.mulf %121, %120 : vector<8x32xf32>
    %123 = math.tanh %122 : vector<8x32xf32>
    %cst_58 = arith.constant 1.000000e+00 : f32
    %124 = vector.broadcast %cst_58 : f32 to vector<8x32xf32>
    %125 = arith.addf %123, %124 : vector<8x32xf32>
    %cst_59 = arith.constant 5.000000e-01 : f32
    %126 = vector.broadcast %cst_59 : f32 to vector<8x32xf32>
    %127 = arith.mulf %126, %125 : vector<8x32xf32>
    %128 = vector.extract_strided_slice %119 {offsets = [0, 32], sizes = [8, 32], strides = [1, 1]} : vector<8x128xf32> to vector<8x32xf32>
    %cst_60 = arith.constant 5.000000e-01 : f32
    %129 = vector.broadcast %cst_60 : f32 to vector<8x32xf32>
    %130 = arith.mulf %129, %128 : vector<8x32xf32>
    %131 = math.tanh %130 : vector<8x32xf32>
    %cst_61 = arith.constant 1.000000e+00 : f32
    %132 = vector.broadcast %cst_61 : f32 to vector<8x32xf32>
    %133 = arith.addf %131, %132 : vector<8x32xf32>
    %cst_62 = arith.constant 5.000000e-01 : f32
    %134 = vector.broadcast %cst_62 : f32 to vector<8x32xf32>
    %135 = arith.mulf %134, %133 : vector<8x32xf32>
    %136 = vector.extract_strided_slice %119 {offsets = [0, 64], sizes = [8, 32], strides = [1, 1]} : vector<8x128xf32> to vector<8x32xf32>
    %137 = math.tanh %136 : vector<8x32xf32>
    %138 = vector.extract_strided_slice %119 {offsets = [0, 96], sizes = [8, 32], strides = [1, 1]} : vector<8x128xf32> to vector<8x32xf32>
    %cst_63 = arith.constant 5.000000e-01 : f32
    %139 = vector.broadcast %cst_63 : f32 to vector<8x32xf32>
    %140 = arith.mulf %139, %138 : vector<8x32xf32>
    %141 = math.tanh %140 : vector<8x32xf32>
    %cst_64 = arith.constant 1.000000e+00 : f32
    %142 = vector.broadcast %cst_64 : f32 to vector<8x32xf32>
    %143 = arith.addf %141, %142 : vector<8x32xf32>
    %cst_65 = arith.constant 5.000000e-01 : f32
    %144 = vector.broadcast %cst_65 : f32 to vector<8x32xf32>
    %145 = arith.mulf %144, %143 : vector<8x32xf32>
    %146 = arith.mulf %135, %113 : vector<8x32xf32>
    %147 = arith.mulf %127, %137 : vector<8x32xf32>
    %148 = arith.addf %146, %147 : vector<8x32xf32>
    %149 = math.tanh %148 : vector<8x32xf32>
    %150 = arith.mulf %145, %149 : vector<8x32xf32>
    %c24_66 = arith.constant 24 : index
    %c0_67 = arith.constant 0 : index
    %151 = vector.load %arg15[%c24_66, %c0_67] : memref<64x32xf32, #tpu.memory_space<vmem>>, vector<8x32xf32>
    tpu.vector_store %arg15[%c24_66, %c0_67], %150 {strides = array<i32>} : memref<64x32xf32, #tpu.memory_space<vmem>>, vector<8x32xf32>,
    %c32 = arith.constant 32 : index
    %c0_68 = arith.constant 0 : index
    %152 = vector.load %arg14[%c32, %c0_68] : memref<64x128xf32, #tpu.memory_space<vmem>>, vector<8x128xf32>
    %cst_69 = arith.constant dense<0.000000e+00> : vector<8x128xf32>
    %153 = tpu.matmul %150, %7, %cst_69 {dimension_numbers = #tpu.dot_dimension_numbers<[1], [0], [0], [1], [0, 0, 1, 1], [], []>} : vector<8x32xf32>, vector<32x128xf32>, vector<8x128xf32> -> vector<8x128xf32>
    %154 = arith.addf %152, %153 : vector<8x128xf32>
    %155 = vector.extract_strided_slice %154 {offsets = [0, 0], sizes = [8, 32], strides = [1, 1]} : vector<8x128xf32> to vector<8x32xf32>
    %cst_70 = arith.constant 5.000000e-01 : f32
    %156 = vector.broadcast %cst_70 : f32 to vector<8x32xf32>
    %157 = arith.mulf %156, %155 : vector<8x32xf32>
    %158 = math.tanh %157 : vector<8x32xf32>
    %cst_71 = arith.constant 1.000000e+00 : f32
    %159 = vector.broadcast %cst_71 : f32 to vector<8x32xf32>
    %160 = arith.addf %158, %159 : vector<8x32xf32>
    %cst_72 = arith.constant 5.000000e-01 : f32
    %161 = vector.broadcast %cst_72 : f32 to vector<8x32xf32>
    %162 = arith.mulf %161, %160 : vector<8x32xf32>
    %163 = vector.extract_strided_slice %154 {offsets = [0, 32], sizes = [8, 32], strides = [1, 1]} : vector<8x128xf32> to vector<8x32xf32>
    %cst_73 = arith.constant 5.000000e-01 : f32
    %164 = vector.broadcast %cst_73 : f32 to vector<8x32xf32>
    %165 = arith.mulf %164, %163 : vector<8x32xf32>
    %166 = math.tanh %165 : vector<8x32xf32>
    %cst_74 = arith.constant 1.000000e+00 : f32
    %167 = vector.broadcast %cst_74 : f32 to vector<8x32xf32>
    %168 = arith.addf %166, %167 : vector<8x32xf32>
    %cst_75 = arith.constant 5.000000e-01 : f32
    %169 = vector.broadcast %cst_75 : f32 to vector<8x32xf32>
    %170 = arith.mulf %169, %168 : vector<8x32xf32>
    %171 = vector.extract_strided_slice %154 {offsets = [0, 64], sizes = [8, 32], strides = [1, 1]} : vector<8x128xf32> to vector<8x32xf32>
    %172 = math.tanh %171 : vector<8x32xf32>
    %173 = vector.extract_strided_slice %154 {offsets = [0, 96], sizes = [8, 32], strides = [1, 1]} : vector<8x128xf32> to vector<8x32xf32>
    %cst_76 = arith.constant 5.000000e-01 : f32
    %174 = vector.broadcast %cst_76 : f32 to vector<8x32xf32>
    %175 = arith.mulf %174, %173 : vector<8x32xf32>
    %176 = math.tanh %175 : vector<8x32xf32>
    %cst_77 = arith.constant 1.000000e+00 : f32
    %177 = vector.broadcast %cst_77 : f32 to vector<8x32xf32>
    %178 = arith.addf %176, %177 : vector<8x32xf32>
    %cst_78 = arith.constant 5.000000e-01 : f32
    %179 = vector.broadcast %cst_78 : f32 to vector<8x32xf32>
    %180 = arith.mulf %179, %178 : vector<8x32xf32>
    %181 = arith.mulf %170, %148 : vector<8x32xf32>
    %182 = arith.mulf %162, %172 : vector<8x32xf32>
    %183 = arith.addf %181, %182 : vector<8x32xf32>
    %184 = math.tanh %183 : vector<8x32xf32>
    %185 = arith.mulf %180, %184 : vector<8x32xf32>
    %c32_79 = arith.constant 32 : index
    %c0_80 = arith.constant 0 : index
    %186 = vector.load %arg15[%c32_79, %c0_80] : memref<64x32xf32, #tpu.memory_space<vmem>>, vector<8x32xf32>
    tpu.vector_store %arg15[%c32_79, %c0_80], %185 {strides = array<i32>} : memref<64x32xf32, #tpu.memory_space<vmem>>, vector<8x32xf32>,
    %c40 = arith.constant 40 : index
    %c0_81 = arith.constant 0 : index
    %187 = vector.load %arg14[%c40, %c0_81] : memref<64x128xf32, #tpu.memory_space<vmem>>, vector<8x128xf32>
    %cst_82 = arith.constant dense<0.000000e+00> : vector<8x128xf32>
    %188 = tpu.matmul %185, %7, %cst_82 {dimension_numbers = #tpu.dot_dimension_numbers<[1], [0], [0], [1], [0, 0, 1, 1], [], []>} : vector<8x32xf32>, vector<32x128xf32>, vector<8x128xf32> -> vector<8x128xf32>
    %189 = arith.addf %187, %188 : vector<8x128xf32>
    %190 = vector.extract_strided_slice %189 {offsets = [0, 0], sizes = [8, 32], strides = [1, 1]} : vector<8x128xf32> to vector<8x32xf32>
    %cst_83 = arith.constant 5.000000e-01 : f32
    %191 = vector.broadcast %cst_83 : f32 to vector<8x32xf32>
    %192 = arith.mulf %191, %190 : vector<8x32xf32>
    %193 = math.tanh %192 : vector<8x32xf32>
    %cst_84 = arith.constant 1.000000e+00 : f32
    %194 = vector.broadcast %cst_84 : f32 to vector<8x32xf32>
    %195 = arith.addf %193, %194 : vector<8x32xf32>
    %cst_85 = arith.constant 5.000000e-01 : f32
    %196 = vector.broadcast %cst_85 : f32 to vector<8x32xf32>
    %197 = arith.mulf %196, %195 : vector<8x32xf32>
    %198 = vector.extract_strided_slice %189 {offsets = [0, 32], sizes = [8, 32], strides = [1, 1]} : vector<8x128xf32> to vector<8x32xf32>
    %cst_86 = arith.constant 5.000000e-01 : f32
    %199 = vector.broadcast %cst_86 : f32 to vector<8x32xf32>
    %200 = arith.mulf %199, %198 : vector<8x32xf32>
    %201 = math.tanh %200 : vector<8x32xf32>
    %cst_87 = arith.constant 1.000000e+00 : f32
    %202 = vector.broadcast %cst_87 : f32 to vector<8x32xf32>
    %203 = arith.addf %201, %202 : vector<8x32xf32>
    %cst_88 = arith.constant 5.000000e-01 : f32
    %204 = vector.broadcast %cst_88 : f32 to vector<8x32xf32>
    %205 = arith.mulf %204, %203 : vector<8x32xf32>
    %206 = vector.extract_strided_slice %189 {offsets = [0, 64], sizes = [8, 32], strides = [1, 1]} : vector<8x128xf32> to vector<8x32xf32>
    %207 = math.tanh %206 : vector<8x32xf32>
    %208 = vector.extract_strided_slice %189 {offsets = [0, 96], sizes = [8, 32], strides = [1, 1]} : vector<8x128xf32> to vector<8x32xf32>
    %cst_89 = arith.constant 5.000000e-01 : f32
    %209 = vector.broadcast %cst_89 : f32 to vector<8x32xf32>
    %210 = arith.mulf %209, %208 : vector<8x32xf32>
    %211 = math.tanh %210 : vector<8x32xf32>
    %cst_90 = arith.constant 1.000000e+00 : f32
    %212 = vector.broadcast %cst_90 : f32 to vector<8x32xf32>
    %213 = arith.addf %211, %212 : vector<8x32xf32>
    %cst_91 = arith.constant 5.000000e-01 : f32
    %214 = vector.broadcast %cst_91 : f32 to vector<8x32xf32>
    %215 = arith.mulf %214, %213 : vector<8x32xf32>
    %216 = arith.mulf %205, %183 : vector<8x32xf32>
    %217 = arith.mulf %197, %207 : vector<8x32xf32>
    %218 = arith.addf %216, %217 : vector<8x32xf32>
    %219 = math.tanh %218 : vector<8x32xf32>
    %220 = arith.mulf %215, %219 : vector<8x32xf32>
    %c40_92 = arith.constant 40 : index
    %c0_93 = arith.constant 0 : index
    %221 = vector.load %arg15[%c40_92, %c0_93] : memref<64x32xf32, #tpu.memory_space<vmem>>, vector<8x32xf32>
    tpu.vector_store %arg15[%c40_92, %c0_93], %220 {strides = array<i32>} : memref<64x32xf32, #tpu.memory_space<vmem>>, vector<8x32xf32>,
    %c48 = arith.constant 48 : index
    %c0_94 = arith.constant 0 : index
    %222 = vector.load %arg14[%c48, %c0_94] : memref<64x128xf32, #tpu.memory_space<vmem>>, vector<8x128xf32>
    %cst_95 = arith.constant dense<0.000000e+00> : vector<8x128xf32>
    %223 = tpu.matmul %220, %7, %cst_95 {dimension_numbers = #tpu.dot_dimension_numbers<[1], [0], [0], [1], [0, 0, 1, 1], [], []>} : vector<8x32xf32>, vector<32x128xf32>, vector<8x128xf32> -> vector<8x128xf32>
    %224 = arith.addf %222, %223 : vector<8x128xf32>
    %225 = vector.extract_strided_slice %224 {offsets = [0, 0], sizes = [8, 32], strides = [1, 1]} : vector<8x128xf32> to vector<8x32xf32>
    %cst_96 = arith.constant 5.000000e-01 : f32
    %226 = vector.broadcast %cst_96 : f32 to vector<8x32xf32>
    %227 = arith.mulf %226, %225 : vector<8x32xf32>
    %228 = math.tanh %227 : vector<8x32xf32>
    %cst_97 = arith.constant 1.000000e+00 : f32
    %229 = vector.broadcast %cst_97 : f32 to vector<8x32xf32>
    %230 = arith.addf %228, %229 : vector<8x32xf32>
    %cst_98 = arith.constant 5.000000e-01 : f32
    %231 = vector.broadcast %cst_98 : f32 to vector<8x32xf32>
    %232 = arith.mulf %231, %230 : vector<8x32xf32>
    %233 = vector.extract_strided_slice %224 {offsets = [0, 32], sizes = [8, 32], strides = [1, 1]} : vector<8x128xf32> to vector<8x32xf32>
    %cst_99 = arith.constant 5.000000e-01 : f32
    %234 = vector.broadcast %cst_99 : f32 to vector<8x32xf32>
    %235 = arith.mulf %234, %233 : vector<8x32xf32>
    %236 = math.tanh %235 : vector<8x32xf32>
    %cst_100 = arith.constant 1.000000e+00 : f32
    %237 = vector.broadcast %cst_100 : f32 to vector<8x32xf32>
    %238 = arith.addf %236, %237 : vector<8x32xf32>
    %cst_101 = arith.constant 5.000000e-01 : f32
    %239 = vector.broadcast %cst_101 : f32 to vector<8x32xf32>
    %240 = arith.mulf %239, %238 : vector<8x32xf32>
    %241 = vector.extract_strided_slice %224 {offsets = [0, 64], sizes = [8, 32], strides = [1, 1]} : vector<8x128xf32> to vector<8x32xf32>
    %242 = math.tanh %241 : vector<8x32xf32>
    %243 = vector.extract_strided_slice %224 {offsets = [0, 96], sizes = [8, 32], strides = [1, 1]} : vector<8x128xf32> to vector<8x32xf32>
    %cst_102 = arith.constant 5.000000e-01 : f32
    %244 = vector.broadcast %cst_102 : f32 to vector<8x32xf32>
    %245 = arith.mulf %244, %243 : vector<8x32xf32>
    %246 = math.tanh %245 : vector<8x32xf32>
    %cst_103 = arith.constant 1.000000e+00 : f32
    %247 = vector.broadcast %cst_103 : f32 to vector<8x32xf32>
    %248 = arith.addf %246, %247 : vector<8x32xf32>
    %cst_104 = arith.constant 5.000000e-01 : f32
    %249 = vector.broadcast %cst_104 : f32 to vector<8x32xf32>
    %250 = arith.mulf %249, %248 : vector<8x32xf32>
    %251 = arith.mulf %240, %218 : vector<8x32xf32>
    %252 = arith.mulf %232, %242 : vector<8x32xf32>
    %253 = arith.addf %251, %252 : vector<8x32xf32>
    %254 = math.tanh %253 : vector<8x32xf32>
    %255 = arith.mulf %250, %254 : vector<8x32xf32>
    %c48_105 = arith.constant 48 : index
    %c0_106 = arith.constant 0 : index
    %256 = vector.load %arg15[%c48_105, %c0_106] : memref<64x32xf32, #tpu.memory_space<vmem>>, vector<8x32xf32>
    tpu.vector_store %arg15[%c48_105, %c0_106], %255 {strides = array<i32>} : memref<64x32xf32, #tpu.memory_space<vmem>>, vector<8x32xf32>,
    %c56 = arith.constant 56 : index
    %c0_107 = arith.constant 0 : index
    %257 = vector.load %arg14[%c56, %c0_107] : memref<64x128xf32, #tpu.memory_space<vmem>>, vector<8x128xf32>
    %cst_108 = arith.constant dense<0.000000e+00> : vector<8x128xf32>
    %258 = tpu.matmul %255, %7, %cst_108 {dimension_numbers = #tpu.dot_dimension_numbers<[1], [0], [0], [1], [0, 0, 1, 1], [], []>} : vector<8x32xf32>, vector<32x128xf32>, vector<8x128xf32> -> vector<8x128xf32>
    %259 = arith.addf %257, %258 : vector<8x128xf32>
    %260 = vector.extract_strided_slice %259 {offsets = [0, 0], sizes = [8, 32], strides = [1, 1]} : vector<8x128xf32> to vector<8x32xf32>
    %cst_109 = arith.constant 5.000000e-01 : f32
    %261 = vector.broadcast %cst_109 : f32 to vector<8x32xf32>
    %262 = arith.mulf %261, %260 : vector<8x32xf32>
    %263 = math.tanh %262 : vector<8x32xf32>
    %cst_110 = arith.constant 1.000000e+00 : f32
    %264 = vector.broadcast %cst_110 : f32 to vector<8x32xf32>
    %265 = arith.addf %263, %264 : vector<8x32xf32>
    %cst_111 = arith.constant 5.000000e-01 : f32
    %266 = vector.broadcast %cst_111 : f32 to vector<8x32xf32>
    %267 = arith.mulf %266, %265 : vector<8x32xf32>
    %268 = vector.extract_strided_slice %259 {offsets = [0, 32], sizes = [8, 32], strides = [1, 1]} : vector<8x128xf32> to vector<8x32xf32>
    %cst_112 = arith.constant 5.000000e-01 : f32
    %269 = vector.broadcast %cst_112 : f32 to vector<8x32xf32>
    %270 = arith.mulf %269, %268 : vector<8x32xf32>
    %271 = math.tanh %270 : vector<8x32xf32>
    %cst_113 = arith.constant 1.000000e+00 : f32
    %272 = vector.broadcast %cst_113 : f32 to vector<8x32xf32>
    %273 = arith.addf %271, %272 : vector<8x32xf32>
    %cst_114 = arith.constant 5.000000e-01 : f32
    %274 = vector.broadcast %cst_114 : f32 to vector<8x32xf32>
    %275 = arith.mulf %274, %273 : vector<8x32xf32>
    %276 = vector.extract_strided_slice %259 {offsets = [0, 64], sizes = [8, 32], strides = [1, 1]} : vector<8x128xf32> to vector<8x32xf32>
    %277 = math.tanh %276 : vector<8x32xf32>
    %278 = vector.extract_strided_slice %259 {offsets = [0, 96], sizes = [8, 32], strides = [1, 1]} : vector<8x128xf32> to vector<8x32xf32>
    %cst_115 = arith.constant 5.000000e-01 : f32
    %279 = vector.broadcast %cst_115 : f32 to vector<8x32xf32>
    %280 = arith.mulf %279, %278 : vector<8x32xf32>
    %281 = math.tanh %280 : vector<8x32xf32>
    %cst_116 = arith.constant 1.000000e+00 : f32
    %282 = vector.broadcast %cst_116 : f32 to vector<8x32xf32>
    %283 = arith.addf %281, %282 : vector<8x32xf32>
    %cst_117 = arith.constant 5.000000e-01 : f32
    %284 = vector.broadcast %cst_117 : f32 to vector<8x32xf32>
    %285 = arith.mulf %284, %283 : vector<8x32xf32>
    %286 = arith.mulf %275, %253 : vector<8x32xf32>
    %287 = arith.mulf %267, %277 : vector<8x32xf32>
    %288 = arith.addf %286, %287 : vector<8x32xf32>
    %289 = math.tanh %288 : vector<8x32xf32>
    %290 = arith.mulf %285, %289 : vector<8x32xf32>
    %c56_118 = arith.constant 56 : index
    %c0_119 = arith.constant 0 : index
    %291 = vector.load %arg15[%c56_118, %c0_119] : memref<64x32xf32, #tpu.memory_space<vmem>>, vector<8x32xf32>
    tpu.vector_store %arg15[%c56_118, %c0_119], %290 {strides = array<i32>} : memref<64x32xf32, #tpu.memory_space<vmem>>, vector<8x32xf32>,
    %c0_120 = arith.constant 0 : index
    %c0_121 = arith.constant 0 : index
    %292 = vector.load %arg15[%c0_120, %c0_121] : memref<64x32xf32, #tpu.memory_space<vmem>>, vector<64x32xf32>
    %c0_122 = arith.constant 0 : index
    %c0_123 = arith.constant 0 : index
    %293 = vector.load %arg6[%c0_122, %c0_123] : memref<32x128xf32, #tpu.memory_space<vmem>>, vector<32x128xf32>
    %cst_124 = arith.constant dense<0.000000e+00> : vector<64x128xf32>
    %294 = tpu.matmul %292, %293, %cst_124 {dimension_numbers = #tpu.dot_dimension_numbers<[1], [0], [0], [1], [0, 0, 1, 1], [], []>} : vector<64x32xf32>, vector<32x128xf32>, vector<64x128xf32> -> vector<64x128xf32>
    %c0_125 = arith.constant 0 : index
    %c0_126 = arith.constant 0 : index
    %295 = vector.load %arg8[%c0_125, %c0_126] : memref<1x128xf32, #tpu.memory_space<vmem>>, vector<1x128xf32>
    %296 = vector.broadcast %295 : vector<1x128xf32> to vector<64x128xf32>
    %297 = arith.addf %294, %296 : vector<64x128xf32>
    %c0_127 = arith.constant 0 : index
    %c0_128 = arith.constant 0 : index
    %298 = vector.load %arg14[%c0_127, %c0_128] : memref<64x128xf32, #tpu.memory_space<vmem>>, vector<64x128xf32>
    tpu.vector_store %arg14[%c0_127, %c0_128], %297 {strides = array<i32>} : memref<64x128xf32, #tpu.memory_space<vmem>>, vector<64x128xf32>,
    %c0_129 = arith.constant 0 : index
    %c0_130 = arith.constant 0 : index
    %299 = vector.load %arg7[%c0_129, %c0_130] : memref<32x128xf32, #tpu.memory_space<vmem>>, vector<32x128xf32>
    %c1 = arith.constant 1 : index
    %c0_131 = arith.constant 0 : index
    %c0_132 = arith.constant 0 : index
    %300 = vector.load %arg1[%c1, %c0_131, %c0_132] : memref<2x8x32xf32, #tpu.memory_space<vmem>>, vector<1x8x32xf32>
    %301 = vector.shape_cast %300 : vector<1x8x32xf32> to vector<8x32xf32>
    %c1_133 = arith.constant 1 : index
    %c0_134 = arith.constant 0 : index
    %c0_135 = arith.constant 0 : index
    %302 = vector.load %arg2[%c1_133, %c0_134, %c0_135] : memref<2x8x32xf32, #tpu.memory_space<vmem>>, vector<1x8x32xf32>
    %303 = vector.shape_cast %302 : vector<1x8x32xf32> to vector<8x32xf32>
    %c0_136 = arith.constant 0 : index
    %c0_137 = arith.constant 0 : index
    %304 = vector.load %arg14[%c0_136, %c0_137] : memref<64x128xf32, #tpu.memory_space<vmem>>, vector<8x128xf32>
    %cst_138 = arith.constant dense<0.000000e+00> : vector<8x128xf32>
    %305 = tpu.matmul %301, %299, %cst_138 {dimension_numbers = #tpu.dot_dimension_numbers<[1], [0], [0], [1], [0, 0, 1, 1], [], []>} : vector<8x32xf32>, vector<32x128xf32>, vector<8x128xf32> -> vector<8x128xf32>
    %306 = arith.addf %304, %305 : vector<8x128xf32>
    %307 = vector.extract_strided_slice %306 {offsets = [0, 0], sizes = [8, 32], strides = [1, 1]} : vector<8x128xf32> to vector<8x32xf32>
    %cst_139 = arith.constant 5.000000e-01 : f32
    %308 = vector.broadcast %cst_139 : f32 to vector<8x32xf32>
    %309 = arith.mulf %308, %307 : vector<8x32xf32>
    %310 = math.tanh %309 : vector<8x32xf32>
    %cst_140 = arith.constant 1.000000e+00 : f32
    %311 = vector.broadcast %cst_140 : f32 to vector<8x32xf32>
    %312 = arith.addf %310, %311 : vector<8x32xf32>
    %cst_141 = arith.constant 5.000000e-01 : f32
    %313 = vector.broadcast %cst_141 : f32 to vector<8x32xf32>
    %314 = arith.mulf %313, %312 : vector<8x32xf32>
    %315 = vector.extract_strided_slice %306 {offsets = [0, 32], sizes = [8, 32], strides = [1, 1]} : vector<8x128xf32> to vector<8x32xf32>
    %cst_142 = arith.constant 5.000000e-01 : f32
    %316 = vector.broadcast %cst_142 : f32 to vector<8x32xf32>
    %317 = arith.mulf %316, %315 : vector<8x32xf32>
    %318 = math.tanh %317 : vector<8x32xf32>
    %cst_143 = arith.constant 1.000000e+00 : f32
    %319 = vector.broadcast %cst_143 : f32 to vector<8x32xf32>
    %320 = arith.addf %318, %319 : vector<8x32xf32>
    %cst_144 = arith.constant 5.000000e-01 : f32
    %321 = vector.broadcast %cst_144 : f32 to vector<8x32xf32>
    %322 = arith.mulf %321, %320 : vector<8x32xf32>
    %323 = vector.extract_strided_slice %306 {offsets = [0, 64], sizes = [8, 32], strides = [1, 1]} : vector<8x128xf32> to vector<8x32xf32>
    %324 = math.tanh %323 : vector<8x32xf32>
    %325 = vector.extract_strided_slice %306 {offsets = [0, 96], sizes = [8, 32], strides = [1, 1]} : vector<8x128xf32> to vector<8x32xf32>
    %cst_145 = arith.constant 5.000000e-01 : f32
    %326 = vector.broadcast %cst_145 : f32 to vector<8x32xf32>
    %327 = arith.mulf %326, %325 : vector<8x32xf32>
    %328 = math.tanh %327 : vector<8x32xf32>
    %cst_146 = arith.constant 1.000000e+00 : f32
    %329 = vector.broadcast %cst_146 : f32 to vector<8x32xf32>
    %330 = arith.addf %328, %329 : vector<8x32xf32>
    %cst_147 = arith.constant 5.000000e-01 : f32
    %331 = vector.broadcast %cst_147 : f32 to vector<8x32xf32>
    %332 = arith.mulf %331, %330 : vector<8x32xf32>
    %333 = arith.mulf %322, %303 : vector<8x32xf32>
    %334 = arith.mulf %314, %324 : vector<8x32xf32>
    %335 = arith.addf %333, %334 : vector<8x32xf32>
    %336 = math.tanh %335 : vector<8x32xf32>
    %337 = arith.mulf %332, %336 : vector<8x32xf32>
    %c8_148 = arith.constant 8 : index
    %c0_149 = arith.constant 0 : index
    %338 = vector.load %arg14[%c8_148, %c0_149] : memref<64x128xf32, #tpu.memory_space<vmem>>, vector<8x128xf32>
    %cst_150 = arith.constant dense<0.000000e+00> : vector<8x128xf32>
    %339 = tpu.matmul %337, %299, %cst_150 {dimension_numbers = #tpu.dot_dimension_numbers<[1], [0], [0], [1], [0, 0, 1, 1], [], []>} : vector<8x32xf32>, vector<32x128xf32>, vector<8x128xf32> -> vector<8x128xf32>
    %340 = arith.addf %338, %339 : vector<8x128xf32>
    %341 = vector.extract_strided_slice %340 {offsets = [0, 0], sizes = [8, 32], strides = [1, 1]} : vector<8x128xf32> to vector<8x32xf32>
    %cst_151 = arith.constant 5.000000e-01 : f32
    %342 = vector.broadcast %cst_151 : f32 to vector<8x32xf32>
    %343 = arith.mulf %342, %341 : vector<8x32xf32>
    %344 = math.tanh %343 : vector<8x32xf32>
    %cst_152 = arith.constant 1.000000e+00 : f32
    %345 = vector.broadcast %cst_152 : f32 to vector<8x32xf32>
    %346 = arith.addf %344, %345 : vector<8x32xf32>
    %cst_153 = arith.constant 5.000000e-01 : f32
    %347 = vector.broadcast %cst_153 : f32 to vector<8x32xf32>
    %348 = arith.mulf %347, %346 : vector<8x32xf32>
    %349 = vector.extract_strided_slice %340 {offsets = [0, 32], sizes = [8, 32], strides = [1, 1]} : vector<8x128xf32> to vector<8x32xf32>
    %cst_154 = arith.constant 5.000000e-01 : f32
    %350 = vector.broadcast %cst_154 : f32 to vector<8x32xf32>
    %351 = arith.mulf %350, %349 : vector<8x32xf32>
    %352 = math.tanh %351 : vector<8x32xf32>
    %cst_155 = arith.constant 1.000000e+00 : f32
    %353 = vector.broadcast %cst_155 : f32 to vector<8x32xf32>
    %354 = arith.addf %352, %353 : vector<8x32xf32>
    %cst_156 = arith.constant 5.000000e-01 : f32
    %355 = vector.broadcast %cst_156 : f32 to vector<8x32xf32>
    %356 = arith.mulf %355, %354 : vector<8x32xf32>
    %357 = vector.extract_strided_slice %340 {offsets = [0, 64], sizes = [8, 32], strides = [1, 1]} : vector<8x128xf32> to vector<8x32xf32>
    %358 = math.tanh %357 : vector<8x32xf32>
    %359 = vector.extract_strided_slice %340 {offsets = [0, 96], sizes = [8, 32], strides = [1, 1]} : vector<8x128xf32> to vector<8x32xf32>
    %cst_157 = arith.constant 5.000000e-01 : f32
    %360 = vector.broadcast %cst_157 : f32 to vector<8x32xf32>
    %361 = arith.mulf %360, %359 : vector<8x32xf32>
    %362 = math.tanh %361 : vector<8x32xf32>
    %cst_158 = arith.constant 1.000000e+00 : f32
    %363 = vector.broadcast %cst_158 : f32 to vector<8x32xf32>
    %364 = arith.addf %362, %363 : vector<8x32xf32>
    %cst_159 = arith.constant 5.000000e-01 : f32
    %365 = vector.broadcast %cst_159 : f32 to vector<8x32xf32>
    %366 = arith.mulf %365, %364 : vector<8x32xf32>
    %367 = arith.mulf %356, %335 : vector<8x32xf32>
    %368 = arith.mulf %348, %358 : vector<8x32xf32>
    %369 = arith.addf %367, %368 : vector<8x32xf32>
    %370 = math.tanh %369 : vector<8x32xf32>
    %371 = arith.mulf %366, %370 : vector<8x32xf32>
    %c16_160 = arith.constant 16 : index
    %c0_161 = arith.constant 0 : index
    %372 = vector.load %arg14[%c16_160, %c0_161] : memref<64x128xf32, #tpu.memory_space<vmem>>, vector<8x128xf32>
    %cst_162 = arith.constant dense<0.000000e+00> : vector<8x128xf32>
    %373 = tpu.matmul %371, %299, %cst_162 {dimension_numbers = #tpu.dot_dimension_numbers<[1], [0], [0], [1], [0, 0, 1, 1], [], []>} : vector<8x32xf32>, vector<32x128xf32>, vector<8x128xf32> -> vector<8x128xf32>
    %374 = arith.addf %372, %373 : vector<8x128xf32>
    %375 = vector.extract_strided_slice %374 {offsets = [0, 0], sizes = [8, 32], strides = [1, 1]} : vector<8x128xf32> to vector<8x32xf32>
    %cst_163 = arith.constant 5.000000e-01 : f32
    %376 = vector.broadcast %cst_163 : f32 to vector<8x32xf32>
    %377 = arith.mulf %376, %375 : vector<8x32xf32>
    %378 = math.tanh %377 : vector<8x32xf32>
    %cst_164 = arith.constant 1.000000e+00 : f32
    %379 = vector.broadcast %cst_164 : f32 to vector<8x32xf32>
    %380 = arith.addf %378, %379 : vector<8x32xf32>
    %cst_165 = arith.constant 5.000000e-01 : f32
    %381 = vector.broadcast %cst_165 : f32 to vector<8x32xf32>
    %382 = arith.mulf %381, %380 : vector<8x32xf32>
    %383 = vector.extract_strided_slice %374 {offsets = [0, 32], sizes = [8, 32], strides = [1, 1]} : vector<8x128xf32> to vector<8x32xf32>
    %cst_166 = arith.constant 5.000000e-01 : f32
    %384 = vector.broadcast %cst_166 : f32 to vector<8x32xf32>
    %385 = arith.mulf %384, %383 : vector<8x32xf32>
    %386 = math.tanh %385 : vector<8x32xf32>
    %cst_167 = arith.constant 1.000000e+00 : f32
    %387 = vector.broadcast %cst_167 : f32 to vector<8x32xf32>
    %388 = arith.addf %386, %387 : vector<8x32xf32>
    %cst_168 = arith.constant 5.000000e-01 : f32
    %389 = vector.broadcast %cst_168 : f32 to vector<8x32xf32>
    %390 = arith.mulf %389, %388 : vector<8x32xf32>
    %391 = vector.extract_strided_slice %374 {offsets = [0, 64], sizes = [8, 32], strides = [1, 1]} : vector<8x128xf32> to vector<8x32xf32>
    %392 = math.tanh %391 : vector<8x32xf32>
    %393 = vector.extract_strided_slice %374 {offsets = [0, 96], sizes = [8, 32], strides = [1, 1]} : vector<8x128xf32> to vector<8x32xf32>
    %cst_169 = arith.constant 5.000000e-01 : f32
    %394 = vector.broadcast %cst_169 : f32 to vector<8x32xf32>
    %395 = arith.mulf %394, %393 : vector<8x32xf32>
    %396 = math.tanh %395 : vector<8x32xf32>
    %cst_170 = arith.constant 1.000000e+00 : f32
    %397 = vector.broadcast %cst_170 : f32 to vector<8x32xf32>
    %398 = arith.addf %396, %397 : vector<8x32xf32>
    %cst_171 = arith.constant 5.000000e-01 : f32
    %399 = vector.broadcast %cst_171 : f32 to vector<8x32xf32>
    %400 = arith.mulf %399, %398 : vector<8x32xf32>
    %401 = arith.mulf %390, %369 : vector<8x32xf32>
    %402 = arith.mulf %382, %392 : vector<8x32xf32>
    %403 = arith.addf %401, %402 : vector<8x32xf32>
    %404 = math.tanh %403 : vector<8x32xf32>
    %405 = arith.mulf %400, %404 : vector<8x32xf32>
    %c24_172 = arith.constant 24 : index
    %c0_173 = arith.constant 0 : index
    %406 = vector.load %arg14[%c24_172, %c0_173] : memref<64x128xf32, #tpu.memory_space<vmem>>, vector<8x128xf32>
    %cst_174 = arith.constant dense<0.000000e+00> : vector<8x128xf32>
    %407 = tpu.matmul %405, %299, %cst_174 {dimension_numbers = #tpu.dot_dimension_numbers<[1], [0], [0], [1], [0, 0, 1, 1], [], []>} : vector<8x32xf32>, vector<32x128xf32>, vector<8x128xf32> -> vector<8x128xf32>
    %408 = arith.addf %406, %407 : vector<8x128xf32>
    %409 = vector.extract_strided_slice %408 {offsets = [0, 0], sizes = [8, 32], strides = [1, 1]} : vector<8x128xf32> to vector<8x32xf32>
    %cst_175 = arith.constant 5.000000e-01 : f32
    %410 = vector.broadcast %cst_175 : f32 to vector<8x32xf32>
    %411 = arith.mulf %410, %409 : vector<8x32xf32>
    %412 = math.tanh %411 : vector<8x32xf32>
    %cst_176 = arith.constant 1.000000e+00 : f32
    %413 = vector.broadcast %cst_176 : f32 to vector<8x32xf32>
    %414 = arith.addf %412, %413 : vector<8x32xf32>
    %cst_177 = arith.constant 5.000000e-01 : f32
    %415 = vector.broadcast %cst_177 : f32 to vector<8x32xf32>
    %416 = arith.mulf %415, %414 : vector<8x32xf32>
    %417 = vector.extract_strided_slice %408 {offsets = [0, 32], sizes = [8, 32], strides = [1, 1]} : vector<8x128xf32> to vector<8x32xf32>
    %cst_178 = arith.constant 5.000000e-01 : f32
    %418 = vector.broadcast %cst_178 : f32 to vector<8x32xf32>
    %419 = arith.mulf %418, %417 : vector<8x32xf32>
    %420 = math.tanh %419 : vector<8x32xf32>
    %cst_179 = arith.constant 1.000000e+00 : f32
    %421 = vector.broadcast %cst_179 : f32 to vector<8x32xf32>
    %422 = arith.addf %420, %421 : vector<8x32xf32>
    %cst_180 = arith.constant 5.000000e-01 : f32
    %423 = vector.broadcast %cst_180 : f32 to vector<8x32xf32>
    %424 = arith.mulf %423, %422 : vector<8x32xf32>
    %425 = vector.extract_strided_slice %408 {offsets = [0, 64], sizes = [8, 32], strides = [1, 1]} : vector<8x128xf32> to vector<8x32xf32>
    %426 = math.tanh %425 : vector<8x32xf32>
    %427 = vector.extract_strided_slice %408 {offsets = [0, 96], sizes = [8, 32], strides = [1, 1]} : vector<8x128xf32> to vector<8x32xf32>
    %cst_181 = arith.constant 5.000000e-01 : f32
    %428 = vector.broadcast %cst_181 : f32 to vector<8x32xf32>
    %429 = arith.mulf %428, %427 : vector<8x32xf32>
    %430 = math.tanh %429 : vector<8x32xf32>
    %cst_182 = arith.constant 1.000000e+00 : f32
    %431 = vector.broadcast %cst_182 : f32 to vector<8x32xf32>
    %432 = arith.addf %430, %431 : vector<8x32xf32>
    %cst_183 = arith.constant 5.000000e-01 : f32
    %433 = vector.broadcast %cst_183 : f32 to vector<8x32xf32>
    %434 = arith.mulf %433, %432 : vector<8x32xf32>
    %435 = arith.mulf %424, %403 : vector<8x32xf32>
    %436 = arith.mulf %416, %426 : vector<8x32xf32>
    %437 = arith.addf %435, %436 : vector<8x32xf32>
    %438 = math.tanh %437 : vector<8x32xf32>
    %439 = arith.mulf %434, %438 : vector<8x32xf32>
    %c32_184 = arith.constant 32 : index
    %c0_185 = arith.constant 0 : index
    %440 = vector.load %arg14[%c32_184, %c0_185] : memref<64x128xf32, #tpu.memory_space<vmem>>, vector<8x128xf32>
    %cst_186 = arith.constant dense<0.000000e+00> : vector<8x128xf32>
    %441 = tpu.matmul %439, %299, %cst_186 {dimension_numbers = #tpu.dot_dimension_numbers<[1], [0], [0], [1], [0, 0, 1, 1], [], []>} : vector<8x32xf32>, vector<32x128xf32>, vector<8x128xf32> -> vector<8x128xf32>
    %442 = arith.addf %440, %441 : vector<8x128xf32>
    %443 = vector.extract_strided_slice %442 {offsets = [0, 0], sizes = [8, 32], strides = [1, 1]} : vector<8x128xf32> to vector<8x32xf32>
    %cst_187 = arith.constant 5.000000e-01 : f32
    %444 = vector.broadcast %cst_187 : f32 to vector<8x32xf32>
    %445 = arith.mulf %444, %443 : vector<8x32xf32>
    %446 = math.tanh %445 : vector<8x32xf32>
    %cst_188 = arith.constant 1.000000e+00 : f32
    %447 = vector.broadcast %cst_188 : f32 to vector<8x32xf32>
    %448 = arith.addf %446, %447 : vector<8x32xf32>
    %cst_189 = arith.constant 5.000000e-01 : f32
    %449 = vector.broadcast %cst_189 : f32 to vector<8x32xf32>
    %450 = arith.mulf %449, %448 : vector<8x32xf32>
    %451 = vector.extract_strided_slice %442 {offsets = [0, 32], sizes = [8, 32], strides = [1, 1]} : vector<8x128xf32> to vector<8x32xf32>
    %cst_190 = arith.constant 5.000000e-01 : f32
    %452 = vector.broadcast %cst_190 : f32 to vector<8x32xf32>
    %453 = arith.mulf %452, %451 : vector<8x32xf32>
    %454 = math.tanh %453 : vector<8x32xf32>
    %cst_191 = arith.constant 1.000000e+00 : f32
    %455 = vector.broadcast %cst_191 : f32 to vector<8x32xf32>
    %456 = arith.addf %454, %455 : vector<8x32xf32>
    %cst_192 = arith.constant 5.000000e-01 : f32
    %457 = vector.broadcast %cst_192 : f32 to vector<8x32xf32>
    %458 = arith.mulf %457, %456 : vector<8x32xf32>
    %459 = vector.extract_strided_slice %442 {offsets = [0, 64], sizes = [8, 32], strides = [1, 1]} : vector<8x128xf32> to vector<8x32xf32>
    %460 = math.tanh %459 : vector<8x32xf32>
    %461 = vector.extract_strided_slice %442 {offsets = [0, 96], sizes = [8, 32], strides = [1, 1]} : vector<8x128xf32> to vector<8x32xf32>
    %cst_193 = arith.constant 5.000000e-01 : f32
    %462 = vector.broadcast %cst_193 : f32 to vector<8x32xf32>
    %463 = arith.mulf %462, %461 : vector<8x32xf32>
    %464 = math.tanh %463 : vector<8x32xf32>
    %cst_194 = arith.constant 1.000000e+00 : f32
    %465 = vector.broadcast %cst_194 : f32 to vector<8x32xf32>
    %466 = arith.addf %464, %465 : vector<8x32xf32>
    %cst_195 = arith.constant 5.000000e-01 : f32
    %467 = vector.broadcast %cst_195 : f32 to vector<8x32xf32>
    %468 = arith.mulf %467, %466 : vector<8x32xf32>
    %469 = arith.mulf %458, %437 : vector<8x32xf32>
    %470 = arith.mulf %450, %460 : vector<8x32xf32>
    %471 = arith.addf %469, %470 : vector<8x32xf32>
    %472 = math.tanh %471 : vector<8x32xf32>
    %473 = arith.mulf %468, %472 : vector<8x32xf32>
    %c40_196 = arith.constant 40 : index
    %c0_197 = arith.constant 0 : index
    %474 = vector.load %arg14[%c40_196, %c0_197] : memref<64x128xf32, #tpu.memory_space<vmem>>, vector<8x128xf32>
    %cst_198 = arith.constant dense<0.000000e+00> : vector<8x128xf32>
    %475 = tpu.matmul %473, %299, %cst_198 {dimension_numbers = #tpu.dot_dimension_numbers<[1], [0], [0], [1], [0, 0, 1, 1], [], []>} : vector<8x32xf32>, vector<32x128xf32>, vector<8x128xf32> -> vector<8x128xf32>
    %476 = arith.addf %474, %475 : vector<8x128xf32>
    %477 = vector.extract_strided_slice %476 {offsets = [0, 0], sizes = [8, 32], strides = [1, 1]} : vector<8x128xf32> to vector<8x32xf32>
    %cst_199 = arith.constant 5.000000e-01 : f32
    %478 = vector.broadcast %cst_199 : f32 to vector<8x32xf32>
    %479 = arith.mulf %478, %477 : vector<8x32xf32>
    %480 = math.tanh %479 : vector<8x32xf32>
    %cst_200 = arith.constant 1.000000e+00 : f32
    %481 = vector.broadcast %cst_200 : f32 to vector<8x32xf32>
    %482 = arith.addf %480, %481 : vector<8x32xf32>
    %cst_201 = arith.constant 5.000000e-01 : f32
    %483 = vector.broadcast %cst_201 : f32 to vector<8x32xf32>
    %484 = arith.mulf %483, %482 : vector<8x32xf32>
    %485 = vector.extract_strided_slice %476 {offsets = [0, 32], sizes = [8, 32], strides = [1, 1]} : vector<8x128xf32> to vector<8x32xf32>
    %cst_202 = arith.constant 5.000000e-01 : f32
    %486 = vector.broadcast %cst_202 : f32 to vector<8x32xf32>
    %487 = arith.mulf %486, %485 : vector<8x32xf32>
    %488 = math.tanh %487 : vector<8x32xf32>
    %cst_203 = arith.constant 1.000000e+00 : f32
    %489 = vector.broadcast %cst_203 : f32 to vector<8x32xf32>
    %490 = arith.addf %488, %489 : vector<8x32xf32>
    %cst_204 = arith.constant 5.000000e-01 : f32
    %491 = vector.broadcast %cst_204 : f32 to vector<8x32xf32>
    %492 = arith.mulf %491, %490 : vector<8x32xf32>
    %493 = vector.extract_strided_slice %476 {offsets = [0, 64], sizes = [8, 32], strides = [1, 1]} : vector<8x128xf32> to vector<8x32xf32>
    %494 = math.tanh %493 : vector<8x32xf32>
    %495 = vector.extract_strided_slice %476 {offsets = [0, 96], sizes = [8, 32], strides = [1, 1]} : vector<8x128xf32> to vector<8x32xf32>
    %cst_205 = arith.constant 5.000000e-01 : f32
    %496 = vector.broadcast %cst_205 : f32 to vector<8x32xf32>
    %497 = arith.mulf %496, %495 : vector<8x32xf32>
    %498 = math.tanh %497 : vector<8x32xf32>
    %cst_206 = arith.constant 1.000000e+00 : f32
    %499 = vector.broadcast %cst_206 : f32 to vector<8x32xf32>
    %500 = arith.addf %498, %499 : vector<8x32xf32>
    %cst_207 = arith.constant 5.000000e-01 : f32
    %501 = vector.broadcast %cst_207 : f32 to vector<8x32xf32>
    %502 = arith.mulf %501, %500 : vector<8x32xf32>
    %503 = arith.mulf %492, %471 : vector<8x32xf32>
    %504 = arith.mulf %484, %494 : vector<8x32xf32>
    %505 = arith.addf %503, %504 : vector<8x32xf32>
    %506 = math.tanh %505 : vector<8x32xf32>
    %507 = arith.mulf %502, %506 : vector<8x32xf32>
    %c48_208 = arith.constant 48 : index
    %c0_209 = arith.constant 0 : index
    %508 = vector.load %arg14[%c48_208, %c0_209] : memref<64x128xf32, #tpu.memory_space<vmem>>, vector<8x128xf32>
    %cst_210 = arith.constant dense<0.000000e+00> : vector<8x128xf32>
    %509 = tpu.matmul %507, %299, %cst_210 {dimension_numbers = #tpu.dot_dimension_numbers<[1], [0], [0], [1], [0, 0, 1, 1], [], []>} : vector<8x32xf32>, vector<32x128xf32>, vector<8x128xf32> -> vector<8x128xf32>
    %510 = arith.addf %508, %509 : vector<8x128xf32>
    %511 = vector.extract_strided_slice %510 {offsets = [0, 0], sizes = [8, 32], strides = [1, 1]} : vector<8x128xf32> to vector<8x32xf32>
    %cst_211 = arith.constant 5.000000e-01 : f32
    %512 = vector.broadcast %cst_211 : f32 to vector<8x32xf32>
    %513 = arith.mulf %512, %511 : vector<8x32xf32>
    %514 = math.tanh %513 : vector<8x32xf32>
    %cst_212 = arith.constant 1.000000e+00 : f32
    %515 = vector.broadcast %cst_212 : f32 to vector<8x32xf32>
    %516 = arith.addf %514, %515 : vector<8x32xf32>
    %cst_213 = arith.constant 5.000000e-01 : f32
    %517 = vector.broadcast %cst_213 : f32 to vector<8x32xf32>
    %518 = arith.mulf %517, %516 : vector<8x32xf32>
    %519 = vector.extract_strided_slice %510 {offsets = [0, 32], sizes = [8, 32], strides = [1, 1]} : vector<8x128xf32> to vector<8x32xf32>
    %cst_214 = arith.constant 5.000000e-01 : f32
    %520 = vector.broadcast %cst_214 : f32 to vector<8x32xf32>
    %521 = arith.mulf %520, %519 : vector<8x32xf32>
    %522 = math.tanh %521 : vector<8x32xf32>
    %cst_215 = arith.constant 1.000000e+00 : f32
    %523 = vector.broadcast %cst_215 : f32 to vector<8x32xf32>
    %524 = arith.addf %522, %523 : vector<8x32xf32>
    %cst_216 = arith.constant 5.000000e-01 : f32
    %525 = vector.broadcast %cst_216 : f32 to vector<8x32xf32>
    %526 = arith.mulf %525, %524 : vector<8x32xf32>
    %527 = vector.extract_strided_slice %510 {offsets = [0, 64], sizes = [8, 32], strides = [1, 1]} : vector<8x128xf32> to vector<8x32xf32>
    %528 = math.tanh %527 : vector<8x32xf32>
    %529 = vector.extract_strided_slice %510 {offsets = [0, 96], sizes = [8, 32], strides = [1, 1]} : vector<8x128xf32> to vector<8x32xf32>
    %cst_217 = arith.constant 5.000000e-01 : f32
    %530 = vector.broadcast %cst_217 : f32 to vector<8x32xf32>
    %531 = arith.mulf %530, %529 : vector<8x32xf32>
    %532 = math.tanh %531 : vector<8x32xf32>
    %cst_218 = arith.constant 1.000000e+00 : f32
    %533 = vector.broadcast %cst_218 : f32 to vector<8x32xf32>
    %534 = arith.addf %532, %533 : vector<8x32xf32>
    %cst_219 = arith.constant 5.000000e-01 : f32
    %535 = vector.broadcast %cst_219 : f32 to vector<8x32xf32>
    %536 = arith.mulf %535, %534 : vector<8x32xf32>
    %537 = arith.mulf %526, %505 : vector<8x32xf32>
    %538 = arith.mulf %518, %528 : vector<8x32xf32>
    %539 = arith.addf %537, %538 : vector<8x32xf32>
    %540 = math.tanh %539 : vector<8x32xf32>
    %541 = arith.mulf %536, %540 : vector<8x32xf32>
    %c56_220 = arith.constant 56 : index
    %c0_221 = arith.constant 0 : index
    %542 = vector.load %arg14[%c56_220, %c0_221] : memref<64x128xf32, #tpu.memory_space<vmem>>, vector<8x128xf32>
    %cst_222 = arith.constant dense<0.000000e+00> : vector<8x128xf32>
    %543 = tpu.matmul %541, %299, %cst_222 {dimension_numbers = #tpu.dot_dimension_numbers<[1], [0], [0], [1], [0, 0, 1, 1], [], []>} : vector<8x32xf32>, vector<32x128xf32>, vector<8x128xf32> -> vector<8x128xf32>
    %544 = arith.addf %542, %543 : vector<8x128xf32>
    %545 = vector.extract_strided_slice %544 {offsets = [0, 0], sizes = [8, 32], strides = [1, 1]} : vector<8x128xf32> to vector<8x32xf32>
    %cst_223 = arith.constant 5.000000e-01 : f32
    %546 = vector.broadcast %cst_223 : f32 to vector<8x32xf32>
    %547 = arith.mulf %546, %545 : vector<8x32xf32>
    %548 = math.tanh %547 : vector<8x32xf32>
    %cst_224 = arith.constant 1.000000e+00 : f32
    %549 = vector.broadcast %cst_224 : f32 to vector<8x32xf32>
    %550 = arith.addf %548, %549 : vector<8x32xf32>
    %cst_225 = arith.constant 5.000000e-01 : f32
    %551 = vector.broadcast %cst_225 : f32 to vector<8x32xf32>
    %552 = arith.mulf %551, %550 : vector<8x32xf32>
    %553 = vector.extract_strided_slice %544 {offsets = [0, 32], sizes = [8, 32], strides = [1, 1]} : vector<8x128xf32> to vector<8x32xf32>
    %cst_226 = arith.constant 5.000000e-01 : f32
    %554 = vector.broadcast %cst_226 : f32 to vector<8x32xf32>
    %555 = arith.mulf %554, %553 : vector<8x32xf32>
    %556 = math.tanh %555 : vector<8x32xf32>
    %cst_227 = arith.constant 1.000000e+00 : f32
    %557 = vector.broadcast %cst_227 : f32 to vector<8x32xf32>
    %558 = arith.addf %556, %557 : vector<8x32xf32>
    %cst_228 = arith.constant 5.000000e-01 : f32
    %559 = vector.broadcast %cst_228 : f32 to vector<8x32xf32>
    %560 = arith.mulf %559, %558 : vector<8x32xf32>
    %561 = vector.extract_strided_slice %544 {offsets = [0, 64], sizes = [8, 32], strides = [1, 1]} : vector<8x128xf32> to vector<8x32xf32>
    %562 = math.tanh %561 : vector<8x32xf32>
    %563 = vector.extract_strided_slice %544 {offsets = [0, 96], sizes = [8, 32], strides = [1, 1]} : vector<8x128xf32> to vector<8x32xf32>
    %cst_229 = arith.constant 5.000000e-01 : f32
    %564 = vector.broadcast %cst_229 : f32 to vector<8x32xf32>
    %565 = arith.mulf %564, %563 : vector<8x32xf32>
    %566 = math.tanh %565 : vector<8x32xf32>
    %cst_230 = arith.constant 1.000000e+00 : f32
    %567 = vector.broadcast %cst_230 : f32 to vector<8x32xf32>
    %568 = arith.addf %566, %567 : vector<8x32xf32>
    %cst_231 = arith.constant 5.000000e-01 : f32
    %569 = vector.broadcast %cst_231 : f32 to vector<8x32xf32>
    %570 = arith.mulf %569, %568 : vector<8x32xf32>
    %571 = arith.mulf %560, %539 : vector<8x32xf32>
    %572 = arith.mulf %552, %562 : vector<8x32xf32>
    %573 = arith.addf %571, %572 : vector<8x32xf32>
    %574 = math.tanh %573 : vector<8x32xf32>
    %575 = arith.mulf %570, %574 : vector<8x32xf32>
    %c0_232 = arith.constant 0 : index
    %c0_233 = arith.constant 0 : index
    %576 = vector.load %arg9[%c0_232, %c0_233] : memref<32x16xf32, #tpu.memory_space<vmem>>, vector<32x16xf32>
    %cst_234 = arith.constant dense<0.000000e+00> : vector<8x16xf32>
    %577 = tpu.matmul %575, %576, %cst_234 {dimension_numbers = #tpu.dot_dimension_numbers<[1], [0], [0], [1], [0, 0, 1, 1], [], []>} : vector<8x32xf32>, vector<32x16xf32>, vector<8x16xf32> -> vector<8x16xf32>
    %c0_235 = arith.constant 0 : index
    %c0_236 = arith.constant 0 : index
    %578 = vector.load %arg10[%c0_235, %c0_236] : memref<1x16xf32, #tpu.memory_space<vmem>>, vector<1x16xf32>
    %579 = vector.broadcast %578 : vector<1x16xf32> to vector<8x16xf32>
    %580 = arith.addf %577, %579 : vector<8x16xf32>
    %581 = math.tanh %580 : vector<8x16xf32>
    %c0_237 = arith.constant 0 : index
    %c0_238 = arith.constant 0 : index
    %582 = vector.load %arg11[%c0_237, %c0_238] : memref<16x8xf32, #tpu.memory_space<vmem>>, vector<16x8xf32>
    %cst_239 = arith.constant dense<0.000000e+00> : vector<8x8xf32>
    %583 = tpu.matmul %581, %582, %cst_239 {dimension_numbers = #tpu.dot_dimension_numbers<[1], [0], [0], [1], [0, 0, 1, 1], [], []>} : vector<8x16xf32>, vector<16x8xf32>, vector<8x8xf32> -> vector<8x8xf32>
    %c0_240 = arith.constant 0 : index
    %c0_241 = arith.constant 0 : index
    %584 = vector.load %arg12[%c0_240, %c0_241] : memref<1x8xf32, #tpu.memory_space<vmem>>, vector<1x8xf32>
    %585 = vector.broadcast %584 : vector<1x8xf32> to vector<8x8xf32>
    %586 = arith.addf %583, %585 : vector<8x8xf32>
    %c0_242 = arith.constant 0 : index
    %c0_243 = arith.constant 0 : index
    %587 = vector.load %arg13[%c0_242, %c0_243] : memref<8x8xf32, #tpu.memory_space<vmem>>, vector<8x8xf32>
    tpu.vector_store %arg13[%c0_242, %c0_243], %586 {strides = array<i32>} : memref<8x8xf32, #tpu.memory_space<vmem>>, vector<8x8xf32>,
    return
  }
}

</mosaic_0001>

<bundles_post_ra>
// kernel: lstm_mse_forward.1
= control target key start
LH: loop header
LB: loop body
LE: loop exit
PB: predicated region body
PF: predicated region fallthrough
CT: control target
= control target key end

     0   :  { %vm60_vm0 = vcmask 64512   ;;  %v2744_v0 = vmov 0.0|0.0   ;;  %vm2745_vm1 = vmmov 0   ;;  %v2746_v4 = vmov 0.0   ;;  %s2747_s24 = smov 64   ;;  %s2748_s27 = smov 32   ;;  %s3203_s4 = inlined_call_operand.vmem [shape: f32[32,128], index: 4, kind: input, shape index: {}]   ;;  %s3204_s3 = inlined_call_operand.vmem [shape: f32[8,128], index: 3, kind: input, shape index: {}]   ;;  %s3205_s0 = inlined_call_operand.vmem [shape: f32[64,8], index: 0, kind: input, shape index: {}]   ;;  %s3206_s1 = inlined_call_operand.vmem [shape: f32[2,8,32], index: 1, kind: input, shape index: {}]   ;;  %s3207_s5 = inlined_call_operand.vmem [shape: f32[1,128], index: 5, kind: input, shape index: {}]   ;;  %s3208_s2 = inlined_call_operand.vmem [shape: f32[2,8,32], index: 2, kind: input, shape index: {}]   ;;  %s3209_s6 = inlined_call_operand.vmem [shape: f32[32,128], index: 6, kind: input, shape index: {}]   ;;  %s3210_s7 = inlined_call_operand.vmem [shape: f32[32,128], index: 7, kind: input, shape index: {}]   ;;  %s3211_s8 = inlined_call_operand.vmem [shape: f32[1,128], index: 8, kind: input, shape index: {}]   ;;  %s3212_s9 = inlined_call_operand.vmem [shape: f32[32,16], index: 9, kind: input, shape index: {}]   ;;  %s3213_s11 = inlined_call_operand.vmem [shape: f32[16,8], index: 11, kind: input, shape index: {}]   ;;  %s3214_s10 = inlined_call_operand.vmem [shape: f32[1,16], index: 10, kind: input, shape index: {}]   ;;  %s3215_s12 = inlined_call_operand.vmem [shape: f32[1,8], index: 12, kind: input, shape index: {}]   ;;  %s3216_s13 = inlined_call_operand.vmem [shape: f32[8,8], index: 13, kind: output, shape index: {}]  }
   0x1   :  { %2528 = vmatprep.subr.bf16.mxu1 %v2744_v0  ;;  %v198_v1 = vld [vmem:[%s3203_s4] sm:$0xff]  ;;  %v199_v2 = vld [vmem:[%s3203_s4 + $0x8] sm:$0xff]  ;;  %2322 = vmatprep.mubr.msk.f32.mxu1 %vm2745_vm1, %v2746_v4  ;;  %v200_v8 = vld [vmem:[%s3203_s4 + $0x10] sm:$0xff]  ;;  %vm205_vm2 = vcmask 261120   ;;  %vm2072_vm3 = vcmask 130048  }
   0x2   :  { %v52_v3 = vld [vmem:[%s3204_s3] sm:$0xff]  ;;  %v2831_v5 = vpack.c.bf16 %v199_v2, %v198_v1  ;;  %v45_v7 = vld [vmem:[%s3205_s0 + $0x8] sm:$0xff]  ;;  %v201_v9 = vld [vmem:[%s3203_s4 + $0x18] sm:$0xff] }
   0x3   :  { %2300 = vmatprep.subr.mxu0 %v52_v3  ;;  %v44_v6 = vld [vmem:[%s3205_s0] sm:$0xff]  ;;  %v2848_v10 = vpack.c.bf16 %v201_v9, %v200_v8  ;;  %v46_v49 = vld [vmem:[%s3205_s0 + $0x10] sm:$0xff]  ;;  %v47_v50 = vld [vmem:[%s3205_s0 + $0x18] sm:$0xff] }
   0x4   :  { %2301 = vmatpush3.msra.mxu0 %v52_v3  ;;  %2302 = vmatprep.mubr.msk.f32.mxu0 %vm60_vm0, %v44_v6  ;;  %v202_v11 = vld [vmem:[%s3206_s1] sm:$0xff]  ;;  %v49_v52 = vld [vmem:[%s3205_s0 + $0x28] sm:$0xff]  ;;  %v50_v53 = vld [vmem:[%s3205_s0 + $0x30] sm:$0xff] }
   0x5   :  { %2530 = vmatpush3.bf16.msra.mxu1 %v2831_v5  ;;  %2303 = vmatmul.mubr.msk.f32.vlgmr.msra.gmra.mrb[0].mxu0 %vm60_vm0, %v45_v7  ;;  %v2871_v13 = vld [vmem:[%s3207_s5] ss:$0 sm:$0xff]  ;;  %v51_v54 = vld [vmem:[%s3205_s0 + $0x38] sm:$0xff] }
   0x6   :  { %2531 = vmatprep.subr.bf16.mxu1 %v2744_v0  ;;  %2540 = vmatprep.subr.bf16.mxu0 %v2744_v0  ;;  %v203_v20 = vld [vmem:[%s3208_s2] sm:$0xff] }
   0x7   :  { %2542 = vmatpush3.bf16.msra.mxu0 %v2831_v5  ;;  %v48_v51 = vld [vmem:[%s3205_s0 + $0x20] sm:$0xff]  ;;  %2305 = vmatprep.mubr.msk.f32.mxu0 %vm60_vm0, %v46_v49 }
   0x8   :  { %2543 = vmatprep.subr.bf16.mxu0 %v2744_v0 }
   0x9   :  { %2533 = vmatpush3.bf16.msra.mxu1 %v2848_v10  ;;  %2306 = vmatmul.mubr.msk.f32.gmra.mrb[2].mxu0 %vm60_vm0, %v47_v50 }
   0xa   :  { %2534 = vmatprep.subr.bf16.mxu1 %v2744_v0  ;;  %2308 = vmatprep.mubr.msk.f32.mxu0 %vm60_vm0, %v48_v51 }
   0xb   :  { %2545 = vmatpush3.bf16.msra.mxu0 %v2848_v10 }
   0xc   :  { %2323 = vmatmul.mubr.msk.f32.vlgmr.msra.gmra.mrb[0].mxu1 %vm205_vm2, %v202_v11  ;;  %2552 = vmatprep.subr.bf16.mxu0 %v2744_v0 }
   0xd   :  { %2536 = vmatpush3.bf16.msra.mxu1 %v2831_v5  ;;  %2333 = vmatprep.mubr.msk.f32.mxu1 %vm2745_vm1, %v2746_v4 }
   0xe   :  { %2537 = vmatprep.subr.bf16.mxu1 %v2744_v0  ;;  %2309 = vmatmul.mubr.msk.f32.gmra.mrb[4].mxu0 %vm60_vm0, %v49_v52 }
   0xf   :  { %2311 = vmatprep.mubr.msk.f32.mxu0 %vm60_vm0, %v50_v53 }
  0x11   :  { %2539 = vmatpush3.bf16.msra.mxu1 %v2848_v10 }
  0x12   :  { %2546 = vmatprep.subr.bf16.mxu1 %v2744_v0  ;;  %2312 = vmatmul.mubr.msk.f32.gmra.mrb[6].mxu0 %vm60_vm0, %v51_v54 }
  0x13   :  { %2344 = vmatprep.mubr.msk.f32.mxu0 %vm2745_vm1, %v2746_v4 }
  0xd8   :  { %v2304_v12 = vpop.f32.mrb[0].mxu0 }
  0xd9   :  { %v151_v14 = vpop.f32.mrb[1].mxu0  ;;  %v157_v35 = vadd.f32 %v2304_v12, %v2871_v13 }
  0xda   :  { %v152_v15 = vadd.f32 %v2871_v13, %v151_v14 }
  0xdc   :  { %v2307_v58 = vpop.f32.mrb[2].mxu0 }
  0xdd   :  { %v161_v59 = vpop.f32.mrb[3].mxu0 }
  0xde   :  { %v162_v2 = vadd.f32 %v2871_v13, %v161_v59 }
  0xdf   :  { %v275_v16 = vpop.f32.mrb[0].mxu1 }
  0xe0   :  { %v279_v17 = vadd.f32 %v275_v16, %v152_v15  ;;  %v2324_v18 = vpop.f32.mrb[1].mxu1 }
  0xe1   :  { %v2921_v60 = vpop.f32.mrb[4].mxu0 }
  0xe2   :  { %2646 = vtanh.f32 %v279_v17  ;;  %v280_v21 = vmul.f32 0.5, %v279_v17  ;;  %v2923_v61 = vpop.f32.mrb[5].mxu0 }
  0xe4   :  { %2648 = vtanh.f32 %v280_v21 }
  0xe5   :  { %v2925_v62 = vpop.f32.mrb[6].mxu0 }
  0xe6   :  { %v2927_v63 = vpop.f32.mrb[7].mxu0 }
  0xec   :  { %v2647_v19 = vpop.eup %2646 }
  0xed   :  { %291 = vrot.lane.b32.xlu0 %v2647_v19, %s2747_s24 }
  0xee   :  { %v2649_v22 = vpop.eup %2648 }
  0xef   :  { %v282_v23 = vadd.f32 1.0, %v2649_v22 }
  0xf1   :  { %286 = vrot.lane.b32.xlu0 %v203_v20, %s2748_s27  ;;  %v283_v24 = vmul.f32 0.5, %v282_v23 }
 0x15f   :  { %v292_v25 = vpop.permute.xlu0 %291 }
 0x160   :  { %v294_v26 = vmul.f32 %v292_v25, %v283_v24 }
 0x162   :  { %296 = vrot.lane.b32.xlu1 %v294_v26, %s2748_s27 }
 0x163   :  { %v287_v27 = vpop.permute.xlu0 %286 }
 0x164   :  { %v289_v28 = vmul.f32 %v287_v27, %v283_v24 }
 0x1d4   :  { %v297_v29 = vpop.permute.xlu1 %296 }
 0x1d5   :  { %v299_v30 = vadd.f32 %v297_v29, %v289_v28 }
 0x1d7   :  { %2650 = vtanh.f32 %v299_v30 }
 0x1e1   :  { %v2651_v31 = vpop.eup %2650 }
 0x1e2   :  { %302 = vrot.lane.b32.xlu1 %v2651_v31, %s2747_s24 }
 0x254   :  { %v303_v32 = vpop.permute.xlu1 %302 }
 0x255   :  { %v305_v33 = vmul.f32 %v303_v32, %v283_v24  ;;  %v167_v24 = vadd.f32 %v2307_v58, %v2871_v13 }
 0x257   :  { %307 = vrot.lane.b32.xlu0 %v305_v33, %s2748_s27 }
 0x2c9   :  { %v308_v34 = vpop.permute.xlu0 %307 }
 0x2ca   :  { %310 = vst.msk [vmem:[#allocation3] sm:$0xff] %vm205_vm2, %v308_v34  ;;  %2334 = vmatmul.mubr.msk.f32.vlgmr.msra.gmra.mrb[2].mxu1 %vm205_vm2, %v308_v34 }
 0x2cb   :  { %2548 = vmatpush3.bf16.msra.mxu1 %v2831_v5  ;;  %2355 = vmatprep.mubr.msk.f32.mxu1 %vm2745_vm1, %v2746_v4 }
 0x2cc   :  { %2549 = vmatprep.subr.bf16.mxu1 %v2744_v0 }
 0x2cf   :  { %2551 = vmatpush3.bf16.msra.mxu1 %v2848_v10 }
 0x2d0   :  { %2558 = vmatprep.subr.bf16.mxu1 %v2744_v0 }
 0x39d   :  { %v380_v36 = vpop.f32.mrb[2].mxu1 }
 0x39e   :  { %v384_v37 = vadd.f32 %v380_v36, %v157_v35  ;;  %v2335_v38 = vpop.f32.mrb[3].mxu1 }
 0x3a0   :  { %2652 = vtanh.f32 %v384_v37  ;;  %v385_v40 = vmul.f32 0.5, %v384_v37 }
 0x3a2   :  { %2654 = vtanh.f32 %v385_v40 }
 0x3aa   :  { %v2653_v39 = vpop.eup %2652 }
 0x3ab   :  { %392 = vrot.lane.b32.xlu1 %v2653_v39, %s2747_s24 }
 0x3ac   :  { %v2655_v41 = vpop.eup %2654 }
 0x3ad   :  { %v387_v42 = vadd.f32 1.0, %v2655_v41 }
 0x3af   :  { %v388_v43 = vmul.f32 0.5, %v387_v42  ;;  %v172_v42 = vadd.f32 %v2871_v13, %v2923_v61  ;;  %v177_v61 = vadd.f32 %v2921_v60, %v2871_v13  ;;  %v1026_v60 = vld [vmem:[%s3209_s6] sm:$0xff] }
 0x3b1   :  { %v390_v46 = vmul.f32 %v388_v43, %v299_v30 }
 0x41d   :  { %v393_v44 = vpop.permute.xlu1 %392 }
 0x41e   :  { %v395_v45 = vmul.f32 %v393_v44, %v388_v43 }
 0x420   :  { %397 = vrot.lane.b32.xlu0 %v395_v45, %s2748_s27 }
 0x492   :  { %v398_v47 = vpop.permute.xlu0 %397 }
 0x493   :  { %v400_v48 = vadd.f32 %v398_v47, %v390_v46 }
 0x495   :  { %2656 = vtanh.f32 %v400_v48 }
 0x49f   :  { %v2657_v55 = vpop.eup %2656 }
 0x4a0   :  { %403 = vrot.lane.b32.xlu1 %v2657_v55, %s2747_s24 }
 0x512   :  { %v404_v56 = vpop.permute.xlu1 %403 }
 0x513   :  { %v406_v57 = vmul.f32 %v404_v56, %v388_v43 }
 0x515   :  { %408 = vrot.lane.b32.xlu0 %v406_v57, %s2748_s27 }
 0x587   :  { %v409_v1 = vpop.permute.xlu0 %408 }
 0x588   :  { %411 = vst.msk [vmem:[#allocation3 + $0x8] sm:$0xff] %vm205_vm2, %v409_v1  ;;  %2345 = vmatmul.mubr.msk.f32.vlgmr.msra.gmra.mrb[8].mxu0 %vm205_vm2, %v409_v1 }
 0x589   :  { %2554 = vmatpush3.bf16.msra.mxu0 %v2831_v5  ;;  %2366 = vmatprep.mubr.msk.f32.mxu0 %vm2745_vm1, %v2746_v4 }
 0x58a   :  { %2555 = vmatprep.subr.bf16.mxu0 %v2744_v0 }
 0x58d   :  { %2557 = vmatpush3.bf16.msra.mxu0 %v2848_v10 }
 0x58e   :  { %2564 = vmatprep.subr.bf16.mxu0 %v2744_v0 }
 0x65b   :  { %v481_v3 = vpop.f32.mrb[8].mxu0 }
 0x65c   :  { %v485_v6 = vadd.f32 %v481_v3, %v162_v2  ;;  %v2346_v7 = vpop.f32.mrb[9].mxu0 }
 0x65e   :  { %2658 = vtanh.f32 %v485_v6  ;;  %v486_v9 = vmul.f32 0.5, %v485_v6 }
 0x660   :  { %2660 = vtanh.f32 %v486_v9 }
 0x668   :  { %v2659_v8 = vpop.eup %2658 }
 0x669   :  { %493 = vrot.lane.b32.xlu1 %v2659_v8, %s2747_s24 }
 0x66a   :  { %v2661_v11 = vpop.eup %2660 }
 0x66b   :  { %v488_v12 = vadd.f32 1.0, %v2661_v11 }
 0x66d   :  { %v489_v14 = vmul.f32 0.5, %v488_v12 }
 0x66f   :  { %v491_v17 = vmul.f32 %v489_v14, %v400_v48 }
 0x6db   :  { %v494_v15 = vpop.permute.xlu1 %493 }
 0x6dc   :  { %v496_v16 = vmul.f32 %v494_v15, %v489_v14 }
 0x6de   :  { %498 = vrot.lane.b32.xlu0 %v496_v16, %s2748_s27  ;;  %v1027_v16 = vld [vmem:[%s3209_s6 + $0x8] sm:$0xff] }
 0x750   :  { %v499_v18 = vpop.permute.xlu0 %498 }
 0x751   :  { %v501_v19 = vadd.f32 %v499_v18, %v491_v17  ;;  %v2576_v17 = vpack.c.bf16 %v1027_v16, %v1026_v60 }
 0x753   :  { %2662 = vtanh.f32 %v501_v19 }
 0x75d   :  { %v2663_v20 = vpop.eup %2662 }
 0x75e   :  { %504 = vrot.lane.b32.xlu1 %v2663_v20, %s2747_s24 }
 0x7d0   :  { %v505_v21 = vpop.permute.xlu1 %504 }
 0x7d1   :  { %v507_v22 = vmul.f32 %v505_v21, %v489_v14  ;;  %v1028_v21 = vld [vmem:[%s3209_s6 + $0x10] sm:$0xff] }
 0x7d3   :  { %509 = vrot.lane.b32.xlu0 %v507_v22, %s2748_s27  ;;  %v1029_v22 = vld [vmem:[%s3209_s6 + $0x18] sm:$0xff] }
 0x845   :  { %v510_v23 = vpop.permute.xlu0 %509 }
 0x846   :  { %512 = vst.msk [vmem:[#allocation3 + $0x10] sm:$0xff] %vm205_vm2, %v510_v23  ;;  %2356 = vmatmul.mubr.msk.f32.vlgmr.msra.gmra.mrb[4].mxu1 %vm205_vm2, %v510_v23  ;;  %v2580_v23 = vpack.c.bf16 %v1029_v22, %v1028_v21 }
 0x847   :  { %2560 = vmatpush3.bf16.msra.mxu1 %v2831_v5  ;;  %2377 = vmatprep.mubr.msk.f32.mxu1 %vm2745_vm1, %v2746_v4 }
 0x848   :  { %2561 = vmatprep.subr.bf16.mxu1 %v2744_v0 }
 0x84b   :  { %2563 = vmatpush3.bf16.msra.mxu1 %v2848_v10 }
 0x84c   :  { %2570 = vmatprep.subr.bf16.mxu1 %v2744_v0 }
 0x919   :  { %v582_v25 = vpop.f32.mrb[4].mxu1 }
 0x91a   :  { %v586_v26 = vadd.f32 %v582_v25, %v167_v24  ;;  %v2357_v27 = vpop.f32.mrb[5].mxu1  ;;  %v1018_v25 = vld [vmem:[#allocation3] sm:$0xff] }
 0x91b   :  { %v1020_v27 = vld [vmem:[#allocation3 + $0x10] sm:$0xff] }
 0x91c   :  { %2664 = vtanh.f32 %v586_v26  ;;  %v587_v29 = vmul.f32 0.5, %v586_v26  ;;  %v1019_v26 = vld [vmem:[#allocation3 + $0x8] sm:$0xff] }
 0x91e   :  { %2666 = vtanh.f32 %v587_v29 }
 0x926   :  { %v2665_v28 = vpop.eup %2664 }
 0x927   :  { %594 = vrot.lane.b32.xlu1 %v2665_v28, %s2747_s24 }
 0x928   :  { %v2667_v30 = vpop.eup %2666 }
 0x929   :  { %v589_v31 = vadd.f32 1.0, %v2667_v30 }
 0x92b   :  { %v590_v32 = vmul.f32 0.5, %v589_v31  ;;  %v182_v31 = vadd.f32 %v2871_v13, %v2927_v63 }
 0x92d   :  { %v592_v35 = vmul.f32 %v590_v32, %v501_v19 }
 0x999   :  { %v595_v33 = vpop.permute.xlu1 %594 }
 0x99a   :  { %v597_v34 = vmul.f32 %v595_v33, %v590_v32 }
 0x99c   :  { %599 = vrot.lane.b32.xlu0 %v597_v34, %s2748_s27 }
 0xa0e   :  { %v600_v36 = vpop.permute.xlu0 %599 }
 0xa0f   :  { %v602_v37 = vadd.f32 %v600_v36, %v592_v35 }
 0xa11   :  { %2668 = vtanh.f32 %v602_v37 }
 0xa1b   :  { %v2669_v38 = vpop.eup %2668 }
 0xa1c   :  { %605 = vrot.lane.b32.xlu1 %v2669_v38, %s2747_s24 }
 0xa8e   :  { %v606_v39 = vpop.permute.xlu1 %605 }
 0xa8f   :  { %v608_v40 = vmul.f32 %v606_v39, %v590_v32 }
 0xa91   :  { %610 = vrot.lane.b32.xlu0 %v608_v40, %s2748_s27 }
 0xb03   :  { %v611_v41 = vpop.permute.xlu0 %610 }
 0xb04   :  { %613 = vst.msk [vmem:[#allocation3 + $0x18] sm:$0xff] %vm205_vm2, %v611_v41  ;;  %2367 = vmatmul.mubr.msk.f32.vlgmr.msra.gmra.mrb[10].mxu0 %vm205_vm2, %v611_v41 }
 0xb05   :  { %2566 = vmatpush3.bf16.msra.mxu0 %v2831_v5  ;;  %2388 = vmatprep.mubr.msk.f32.mxu0 %vm2745_vm1, %v2746_v4 }
 0xb06   :  { %2567 = vmatprep.subr.bf16.mxu0 %v2744_v0 }
 0xb09   :  { %2569 = vmatpush3.bf16.msra.mxu0 %v2848_v10 }
 0xb0a   :  { %2577 = vmatprep.subr.bf16.mxu0 %v2576_v17 }
 0xb0b   :  { %v1021_v28 = vld [vmem:[#allocation3 + $0x18] sm:$0xff] }
 0xbd7   :  { %v683_v43 = vpop.f32.mrb[10].mxu0 }
 0xbd8   :  { %v687_v44 = vadd.f32 %v683_v43, %v172_v42  ;;  %v2368_v45 = vpop.f32.mrb[11].mxu0 }
 0xbda   :  { %2670 = vtanh.f32 %v687_v44  ;;  %v688_v47 = vmul.f32 0.5, %v687_v44 }
 0xbdc   :  { %2672 = vtanh.f32 %v688_v47 }
 0xbe4   :  { %v2671_v46 = vpop.eup %2670 }
 0xbe5   :  { %695 = vrot.lane.b32.xlu1 %v2671_v46, %s2747_s24 }
 0xbe6   :  { %v2673_v48 = vpop.eup %2672 }
 0xbe7   :  { %v690_v49 = vadd.f32 1.0, %v2673_v48 }
 0xbe9   :  { %v691_v50 = vmul.f32 0.5, %v690_v49 }
 0xbeb   :  { %v693_v53 = vmul.f32 %v691_v50, %v602_v37 }
 0xc57   :  { %v696_v51 = vpop.permute.xlu1 %695 }
 0xc58   :  { %v698_v52 = vmul.f32 %v696_v51, %v691_v50  ;;  %v1174_v51 = vld [vmem:[%s3210_s7] sm:$0xff] }
 0xc5a   :  { %700 = vrot.lane.b32.xlu0 %v698_v52, %s2748_s27  ;;  %v1175_v52 = vld [vmem:[%s3210_s7 + $0x8] sm:$0xff] }
 0xccc   :  { %v701_v54 = vpop.permute.xlu0 %700 }
 0xccd   :  { %v703_v55 = vadd.f32 %v701_v54, %v693_v53  ;;  %v3027_v53 = vpack.c.bf16 %v1175_v52, %v1174_v51  ;;  %v1176_v54 = vld [vmem:[%s3210_s7 + $0x10] sm:$0xff] }
 0xccf   :  { %2674 = vtanh.f32 %v703_v55 }
 0xcd9   :  { %v2675_v56 = vpop.eup %2674 }
 0xcda   :  { %706 = vrot.lane.b32.xlu1 %v2675_v56, %s2747_s24 }
 0xd4c   :  { %v707_v57 = vpop.permute.xlu1 %706 }
 0xd4d   :  { %v709_v58 = vmul.f32 %v707_v57, %v691_v50 }
 0xd4f   :  { %711 = vrot.lane.b32.xlu0 %v709_v58, %s2748_s27 }
 0xdc1   :  { %v712_v59 = vpop.permute.xlu0 %711 }
 0xdc2   :  { %714 = vst.msk [vmem:[#allocation3 + $0x20] sm:$0xff] %vm205_vm2, %v712_v59  ;;  %2378 = vmatmul.mubr.msk.f32.vlgmr.msra.gmra.mrb[6].mxu1 %vm205_vm2, %v712_v59  ;;  %v2178_v59 = vld [vmem:[%s3208_s2 + $0x8] sm:$0xff] }
 0xdc3   :  { %2572 = vmatpush3.bf16.msra.mxu1 %v2831_v5  ;;  %2399 = vmatprep.mubr.msk.f32.mxu1 %vm2745_vm1, %v2746_v4 }
 0xdc4   :  { %2573 = vmatprep.subr.bf16.mxu1 %v2744_v0 }
 0xdc7   :  { %2575 = vmatpush3.bf16.msra.mxu1 %v2848_v10 }
 0xdc8   :  { %2584 = vmatprep.subr.bf16.mxu1 %v2744_v0 }
 0xdc9   :  { %v1022_v29 = vld [vmem:[#allocation3 + $0x20] sm:$0xff] }
 0xe95   :  { %v784_v1 = vpop.f32.mrb[6].mxu1 }
 0xe96   :  { %v788_v2 = vadd.f32 %v784_v1, %v177_v61  ;;  %v2379_v3 = vpop.f32.mrb[7].mxu1  ;;  %v2177_v1 = vld [vmem:[%s3206_s1 + $0x8] sm:$0xff] }
 0xe97   :  { %v187_v3 = vadd.f32 %v2925_v62, %v2871_v13 }
 0xe98   :  { %2676 = vtanh.f32 %v788_v2  ;;  %v789_v5 = vmul.f32 0.5, %v788_v2 }
 0xe9a   :  { %2678 = vtanh.f32 %v789_v5 }
 0xea2   :  { %v2677_v6 = vpop.eup %2676 }
 0xea3   :  { %796 = vrot.lane.b32.xlu1 %v2677_v6, %s2747_s24 }
 0xea4   :  { %v2679_v7 = vpop.eup %2678 }
 0xea5   :  { %v791_v8 = vadd.f32 1.0, %v2679_v7 }
 0xea7   :  { %v792_v9 = vmul.f32 0.5, %v791_v8  ;;  %v3070_v8 = vld [vmem:[%s3211_s8] ss:$0 sm:$0xff] }
 0xea9   :  { %v794_v10 = vmul.f32 %v792_v9, %v703_v55  ;;  %v1177_v55 = vld [vmem:[%s3210_s7 + $0x18] sm:$0xff] }
 0xeaa   :  { %v3037_v56 = vpack.c.bf16 %v1177_v55, %v1176_v54 }
 0xf15   :  { %v797_v11 = vpop.permute.xlu1 %796 }
 0xf16   :  { %v799_v12 = vmul.f32 %v797_v11, %v792_v9 }
 0xf18   :  { %801 = vrot.lane.b32.xlu0 %v799_v12, %s2748_s27 }
 0xf8a   :  { %v802_v14 = vpop.permute.xlu0 %801 }
 0xf8b   :  { %v804_v15 = vadd.f32 %v802_v14, %v794_v10 }
 0xf8d   :  { %2680 = vtanh.f32 %v804_v15 }
 0xf97   :  { %v2681_v18 = vpop.eup %2680 }
 0xf98   :  { %807 = vrot.lane.b32.xlu1 %v2681_v18, %s2747_s24 }
0x100a   :  { %v808_v19 = vpop.permute.xlu1 %807 }
0x100b   :  { %v810_v20 = vmul.f32 %v808_v19, %v792_v9 }
0x100d   :  { %812 = vrot.lane.b32.xlu0 %v810_v20, %s2748_s27 }
0x107f   :  { %v813_v24 = vpop.permute.xlu0 %812 }
0x1080   :  { %815 = vst.msk [vmem:[#allocation3 + $0x28] sm:$0xff] %vm205_vm2, %v813_v24  ;;  %2389 = vmatmul.mubr.msk.f32.vlgmr.msra.gmra.mrb[12].mxu0 %vm205_vm2, %v813_v24 }
0x1081   :  { %2579 = vmatpush3.bf16.msra.mxu0 %v2576_v17  ;;  %2410 = vmatprep.mubr.msk.f32.mxu0 %vm205_vm2, %v1018_v25 }
0x1082   :  { %2581 = vmatprep.subr.bf16.mxu0 %v2580_v23 }
0x1085   :  { %2583 = vmatpush3.bf16.msra.mxu0 %v2580_v23 }
0x1086   :  { %2596 = vmatprep.subr.bf16.mxu0 %v2744_v0 }
0x1087   :  { %v1023_v30 = vld [vmem:[#allocation3 + $0x28] sm:$0xff] }
0x1088   :  { %2411 = vmatmul.mubr.msk.f32.vlgmr.msra.gmra.mrb[14].mxu0 %vm205_vm2, %v1019_v26 }
0x1089   :  { %2413 = vmatprep.mubr.msk.f32.mxu0 %vm205_vm2, %v1020_v27  ;;  %2598 = vmatpush3.bf16.msra.mxu0 %v3027_v53 }
0x108a   :  { %2599 = vmatprep.subr.bf16.mxu0 %v2744_v0 }
0x108c   :  { %2414 = vmatmul.mubr.msk.f32.gmra.mrb[16].mxu0 %vm205_vm2, %v1021_v28 }
0x108d   :  { %2416 = vmatprep.mubr.msk.f32.mxu0 %vm205_vm2, %v1022_v29  ;;  %2601 = vmatpush3.bf16.msra.mxu0 %v3037_v56 }
0x108e   :  { %2608 = vmatprep.subr.bf16.mxu0 %v2744_v0 }
0x1090   :  { %2417 = vmatmul.mubr.msk.f32.gmra.mrb[18].mxu0 %vm205_vm2, %v1023_v30 }
0x1153   :  { %v885_v32 = vpop.f32.mrb[12].mxu0 }
0x1154   :  { %v889_v33 = vadd.f32 %v885_v32, %v182_v31  ;;  %v2390_v34 = vpop.f32.mrb[13].mxu0 }
0x1156   :  { %2682 = vtanh.f32 %v889_v33  ;;  %v890_v42 = vmul.f32 0.5, %v889_v33 }
0x1158   :  { %2684 = vtanh.f32 %v890_v42 }
0x115b   :  { %v3005_v35 = vpop.f32.mrb[14].mxu0 }
0x115c   :  { %v1127_v36 = vpop.f32.mrb[15].mxu0 }
0x115d   :  { %v1128_v9 = vadd.f32 %v3070_v8, %v1127_v36 }
0x115f   :  { %v3007_v37 = vpop.f32.mrb[16].mxu0 }
0x1160   :  { %v2683_v38 = vpop.eup %2682  ;;  %v3009_v39 = vpop.f32.mrb[17].mxu0 }
0x1161   :  { %897 = vrot.lane.b32.xlu1 %v2683_v38, %s2747_s24 }
0x1162   :  { %v2685_v63 = vpop.eup %2684 }
0x1163   :  { %v3012_v40 = vpop.f32.mrb[18].mxu0  ;;  %v892_v43 = vadd.f32 1.0, %v2685_v63 }
0x1164   :  { %v3014_v41 = vpop.f32.mrb[19].mxu0 }
0x1165   :  { %v893_v44 = vmul.f32 0.5, %v892_v43  ;;  %v1133_v43 = vadd.f32 %v3005_v35, %v3070_v8 }
0x1167   :  { %v895_v47 = vmul.f32 %v893_v44, %v804_v15 }
0x11d3   :  { %v898_v45 = vpop.permute.xlu1 %897 }
0x11d4   :  { %v900_v46 = vmul.f32 %v898_v45, %v893_v44 }
0x11d6   :  { %902 = vrot.lane.b32.xlu0 %v900_v46, %s2748_s27 }
0x1248   :  { %v903_v48 = vpop.permute.xlu0 %902 }
0x1249   :  { %v3017_v49 = vadd.f32 %v903_v48, %v895_v47 }
0x124b   :  { %2686 = vtanh.f32 %v3017_v49 }
0x1255   :  { %v2687_v50 = vpop.eup %2686 }
0x1256   :  { %908 = vrot.lane.b32.xlu1 %v2687_v50, %s2747_s24 }
0x12c8   :  { %v909_v57 = vpop.permute.xlu1 %908 }
0x12c9   :  { %v911_v58 = vmul.f32 %v909_v57, %v893_v44 }
0x12cb   :  { %913 = vrot.lane.b32.xlu0 %v911_v58, %s2748_s27 }
0x12cf   :  { %1263 = vrot.lane.b32.xlu0 %v2178_v59, %s2748_s27 }
0x133d   :  { %v914_v61 = vpop.permute.xlu0 %913 }
0x133e   :  { %916 = vst.msk [vmem:[#allocation3 + $0x30] sm:$0xff] %vm205_vm2, %v914_v61  ;;  %2400 = vmatmul.mubr.msk.f32.vlgmr.msra.gmra.mrb[8].mxu1 %vm205_vm2, %v914_v61 }
0x133f   :  { %2586 = vmatpush3.bf16.msra.mxu1 %v3027_v53  ;;  %2430 = vmatprep.mubr.msk.f32.mxu1 %vm2745_vm1, %v2746_v4 }
0x1340   :  { %2587 = vmatprep.subr.bf16.mxu1 %v2744_v0 }
0x1341   :  { %v1264_v18 = vpop.permute.xlu0 %1263 }
0x1343   :  { %2589 = vmatpush3.bf16.msra.mxu1 %v3037_v56 }
0x1344   :  { %2590 = vmatprep.subr.bf16.mxu1 %v2744_v0 }
0x1345   :  { %v1024_v2 = vld [vmem:[#allocation3 + $0x30] sm:$0xff] }
0x1346   :  { %2431 = vmatmul.mubr.msk.f32.vlgmr.msra.gmra.mrb[10].mxu1 %vm205_vm2, %v2177_v1  ;;  %2419 = vmatprep.mubr.msk.f32.mxu0 %vm205_vm2, %v1024_v2 }
0x1347   :  { %2592 = vmatpush3.bf16.msra.mxu1 %v3027_v53  ;;  %2441 = vmatprep.mubr.msk.f32.mxu1 %vm2745_vm1, %v2746_v4 }
0x1348   :  { %2593 = vmatprep.subr.bf16.mxu1 %v2744_v0 }
0x134b   :  { %2595 = vmatpush3.bf16.msra.mxu1 %v3037_v56 }
0x134c   :  { %2602 = vmatprep.subr.bf16.mxu1 %v2744_v0 }
0x1411   :  { %v986_v6 = vpop.f32.mrb[8].mxu1 }
0x1412   :  { %v990_v5 = vadd.f32 %v986_v6, %v187_v3  ;;  %v2401_v7 = vpop.f32.mrb[9].mxu1 }
0x1413   :  { %v1138_v7 = vadd.f32 %v3070_v8, %v3009_v39 }
0x1414   :  { %v991_v24 = vmul.f32 0.5, %v990_v5 }
0x1419   :  { %v1252_v11 = vpop.f32.mrb[10].mxu1 }
0x141a   :  { %v1256_v12 = vadd.f32 %v1252_v11, %v1128_v9  ;;  %v2432_v10 = vpop.f32.mrb[11].mxu1 }
0x141c   :  { %2688 = vtanh.f32 %v1256_v12  ;;  %v1257_v15 = vmul.f32 0.5, %v1256_v12 }
0x141e   :  { %2690 = vtanh.f32 %v1257_v15 }
0x1426   :  { %v2689_v14 = vpop.eup %2688 }
0x1427   :  { %1268 = vrot.lane.b32.xlu1 %v2689_v14, %s2747_s24 }
0x1428   :  { %v2691_v13 = vpop.eup %2690 }
0x1429   :  { %v1259_v62 = vadd.f32 1.0, %v2691_v13 }
0x142b   :  { %v1260_v60 = vmul.f32 0.5, %v1259_v62 }
0x142d   :  { %v1266_v19 = vmul.f32 %v1264_v18, %v1260_v60 }
0x1499   :  { %v1269_v16 = vpop.permute.xlu1 %1268 }
0x149a   :  { %v1271_v17 = vmul.f32 %v1269_v16, %v1260_v60 }
0x149c   :  { %1273 = vrot.lane.b32.xlu1 %v1271_v17, %s2748_s27 }
0x150e   :  { %v1274_v20 = vpop.permute.xlu1 %1273 }
0x150f   :  { %v1276_v21 = vadd.f32 %v1274_v20, %v1266_v19 }
0x1511   :  { %2692 = vtanh.f32 %v1276_v21 }
0x1512   :  { %2694 = vtanh.f32 %v990_v5 }
0x1513   :  { %2696 = vtanh.f32 %v991_v24 }
0x151b   :  { %v2693_v22 = vpop.eup %2692 }
0x151c   :  { %1279 = vrot.lane.b32.xlu0 %v2693_v22, %s2747_s24  ;;  %v2695_v23 = vpop.eup %2694 }
0x151d   :  { %v2697_v25 = vpop.eup %2696 }
0x151e   :  { %v993_v26 = vadd.f32 1.0, %v2697_v25 }
0x1520   :  { %998 = vrot.lane.b32.xlu0 %v2695_v23, %s2747_s24  ;;  %v994_v29 = vmul.f32 0.5, %v993_v26  ;;  %v1143_v23 = vadd.f32 %v3007_v37, %v3070_v8 }
0x1522   :  { %v996_v33 = vmul.f32 %v994_v29, %v3017_v49 }
0x158e   :  { %v1280_v27 = vpop.permute.xlu0 %1279 }
0x158f   :  { %v1282_v28 = vmul.f32 %v1280_v27, %v1260_v60 }
0x1591   :  { %1285 = vrot.lane.b32.xlu1 %v1282_v28, %s2748_s27 }
0x1592   :  { %v999_v30 = vpop.permute.xlu0 %998 }
0x1593   :  { %v1001_v31 = vmul.f32 %v999_v30, %v994_v29 }
0x1595   :  { %1003 = vrot.lane.b32.xlu0 %v1001_v31, %s2748_s27 }
0x1603   :  { %v1286_v32 = vpop.permute.xlu1 %1285 }
0x1604   :  { %2442 = vmatmul.mubr.msk.f32.vlgmr.msra.gmra.mrb[12].mxu1 %vm205_vm2, %v1286_v32 }
0x1605   :  { %2604 = vmatpush3.bf16.msra.mxu1 %v3027_v53  ;;  %2463 = vmatprep.mubr.msk.f32.mxu1 %vm2745_vm1, %v2746_v4 }
0x1606   :  { %2605 = vmatprep.subr.bf16.mxu1 %v2744_v0 }
0x1607   :  { %v1004_v34 = vpop.permute.xlu0 %1003 }
0x1608   :  { %v1006_v36 = vadd.f32 %v1004_v34, %v996_v33 }
0x1609   :  { %2607 = vmatpush3.bf16.msra.mxu1 %v3037_v56 }
0x160a   :  { %2698 = vtanh.f32 %v1006_v36  ;;  %2614 = vmatprep.subr.bf16.mxu1 %v2744_v0 }
0x1614   :  { %v2699_v38 = vpop.eup %2698 }
0x1615   :  { %1009 = vrot.lane.b32.xlu0 %v2699_v38, %s2747_s24 }
0x1687   :  { %v1010_v42 = vpop.permute.xlu0 %1009 }
0x1688   :  { %v1012_v63 = vmul.f32 %v1010_v42, %v994_v29 }
0x168a   :  { %1014 = vrot.lane.b32.xlu0 %v1012_v63, %s2748_s27 }
0x16d7   :  { %v1355_v44 = vpop.f32.mrb[12].mxu1 }
0x16d8   :  { %v1359_v45 = vadd.f32 %v1355_v44, %v1133_v43  ;;  %v2443_v46 = vpop.f32.mrb[13].mxu1  ;;  %v1148_v44 = vadd.f32 %v3070_v8, %v3014_v41 }
0x16da   :  { %2700 = vtanh.f32 %v1359_v45  ;;  %v1360_v50 = vmul.f32 0.5, %v1359_v45 }
0x16dc   :  { %2702 = vtanh.f32 %v1360_v50 }
0x16e4   :  { %v2701_v47 = vpop.eup %2700 }
0x16e5   :  { %1367 = vrot.lane.b32.xlu1 %v2701_v47, %s2747_s24 }
0x16e6   :  { %v2703_v51 = vpop.eup %2702 }
0x16e7   :  { %v1362_v35 = vadd.f32 1.0, %v2703_v51 }
0x16e9   :  { %v1363_v52 = vmul.f32 0.5, %v1362_v35 }
0x16eb   :  { %v1365_v57 = vmul.f32 %v1363_v52, %v1276_v21 }
0x16fc   :  { %v1015_v48 = vpop.permute.xlu0 %1014 }
0x16fd   :  { %1017 = vst.msk [vmem:[#allocation3 + $0x38] sm:$0xff] %vm205_vm2, %v1015_v48 }
0x1704   :  { %v1025_v49 = vld [vmem:[#allocation3 + $0x38] sm:$0xff] }
0x1705   :  { %2420 = vmatmul.mubr.msk.f32.gmra.mrb[20].mxu0 %vm205_vm2, %v1025_v49 }
0x1706   :  { %2452 = vmatprep.mubr.msk.f32.mxu0 %vm2745_vm1, %v2746_v4 }
0x1757   :  { %v1368_v54 = vpop.permute.xlu1 %1367 }
0x1758   :  { %v1370_v55 = vmul.f32 %v1368_v54, %v1363_v52 }
0x175a   :  { %1372 = vrot.lane.b32.xlu1 %v1370_v55, %s2748_s27 }
0x17cc   :  { %v1373_v58 = vpop.permute.xlu1 %1372 }
0x17cd   :  { %v1375_v59 = vadd.f32 %v1373_v58, %v1365_v57 }
0x17cf   :  { %2704 = vtanh.f32 %v1375_v59 }
0x17d8   :  { %v3097_v61 = vpop.f32.mrb[20].mxu0 }
0x17d9   :  { %v2705_v1 = vpop.eup %2704  ;;  %v3099_v2 = vpop.f32.mrb[21].mxu0 }
0x17da   :  { %1378 = vrot.lane.b32.xlu1 %v2705_v1, %s2747_s24 }
0x184c   :  { %v1379_v3 = vpop.permute.xlu1 %1378 }
0x184d   :  { %v1381_v6 = vmul.f32 %v1379_v3, %v1363_v52 }
0x184f   :  { %1384 = vrot.lane.b32.xlu1 %v1381_v6, %s2748_s27  ;;  %v1153_v6 = vadd.f32 %v3012_v40, %v3070_v8 }
0x18c1   :  { %v1385_v5 = vpop.permute.xlu1 %1384 }
0x18c2   :  { %2453 = vmatmul.mubr.msk.f32.vlgmr.msra.gmra.mrb[22].mxu0 %vm205_vm2, %v1385_v5 }
0x18c3   :  { %2610 = vmatpush3.bf16.msra.mxu0 %v3027_v53  ;;  %2474 = vmatprep.mubr.msk.f32.mxu0 %vm2745_vm1, %v2746_v4 }
0x18c4   :  { %2611 = vmatprep.subr.bf16.mxu0 %v2744_v0 }
0x18c7   :  { %2613 = vmatpush3.bf16.msra.mxu0 %v3037_v56 }
0x18c8   :  { %2620 = vmatprep.subr.bf16.mxu0 %v2744_v0 }
0x1995   :  { %v1454_v9 = vpop.f32.mrb[22].mxu0 }
0x1996   :  { %v1458_v11 = vadd.f32 %v1454_v9, %v1138_v7  ;;  %v2454_v12 = vpop.f32.mrb[23].mxu0 }
0x1998   :  { %2706 = vtanh.f32 %v1458_v11  ;;  %v1459_v14 = vmul.f32 0.5, %v1458_v11 }
0x199a   :  { %2708 = vtanh.f32 %v1459_v14 }
0x19a2   :  { %v2707_v10 = vpop.eup %2706 }
0x19a3   :  { %1466 = vrot.lane.b32.xlu0 %v2707_v10, %s2747_s24 }
0x19a4   :  { %v2709_v15 = vpop.eup %2708 }
0x19a5   :  { %v1461_v13 = vadd.f32 1.0, %v2709_v15 }
0x19a7   :  { %v1462_v62 = vmul.f32 0.5, %v1461_v13 }
0x19a9   :  { %v1464_v17 = vmul.f32 %v1462_v62, %v1375_v59 }
0x1a15   :  { %v1467_v60 = vpop.permute.xlu0 %1466 }
0x1a16   :  { %v1469_v16 = vmul.f32 %v1467_v60, %v1462_v62 }
0x1a18   :  { %1471 = vrot.lane.b32.xlu1 %v1469_v16, %s2748_s27 }
0x1a8a   :  { %v1472_v18 = vpop.permute.xlu1 %1471 }
0x1a8b   :  { %v1474_v19 = vadd.f32 %v1472_v18, %v1464_v17 }
0x1a8d   :  { %2710 = vtanh.f32 %v1474_v19 }
0x1a97   :  { %v2711_v39 = vpop.eup %2710 }
0x1a98   :  { %1477 = vrot.lane.b32.xlu0 %v2711_v39, %s2747_s24 }
0x1b0a   :  { %v1478_v20 = vpop.permute.xlu0 %1477 }
0x1b0b   :  { %v1480_v21 = vmul.f32 %v1478_v20, %v1462_v62 }
0x1b0d   :  { %1483 = vrot.lane.b32.xlu1 %v1480_v21, %s2748_s27 }
0x1b7f   :  { %v1484_v22 = vpop.permute.xlu1 %1483 }
0x1b80   :  { %2464 = vmatmul.mubr.msk.f32.vlgmr.msra.gmra.mrb[14].mxu1 %vm205_vm2, %v1484_v22 }
0x1b81   :  { %2616 = vmatpush3.bf16.msra.mxu1 %v3027_v53  ;;  %2485 = vmatprep.mubr.msk.f32.mxu1 %vm2745_vm1, %v2746_v4 }
0x1b82   :  { %2617 = vmatprep.subr.bf16.mxu1 %v2744_v0 }
0x1b85   :  { %2619 = vmatpush3.bf16.msra.mxu1 %v3037_v56 }
0x1b86   :  { %2626 = vmatprep.subr.bf16.mxu1 %v2744_v0 }
0x1c53   :  { %v1553_v24 = vpop.f32.mrb[14].mxu1 }
0x1c54   :  { %v1557_v25 = vadd.f32 %v1553_v24, %v1143_v23  ;;  %v2465_v26 = vpop.f32.mrb[15].mxu1 }
0x1c56   :  { %2712 = vtanh.f32 %v1557_v25  ;;  %v1558_v28 = vmul.f32 0.5, %v1557_v25 }
0x1c58   :  { %2714 = vtanh.f32 %v1558_v28 }
0x1c60   :  { %v2713_v27 = vpop.eup %2712 }
0x1c61   :  { %1565 = vrot.lane.b32.xlu0 %v2713_v27, %s2747_s24 }
0x1c62   :  { %v2715_v29 = vpop.eup %2714 }
0x1c63   :  { %v1560_v30 = vadd.f32 1.0, %v2715_v29 }
0x1c65   :  { %v1561_v31 = vmul.f32 0.5, %v1560_v30 }
0x1c67   :  { %v1563_v34 = vmul.f32 %v1561_v31, %v1474_v19  ;;  %v1158_v19 = vadd.f32 %v3070_v8, %v3099_v2 }
0x1cd3   :  { %v1566_v32 = vpop.permute.xlu0 %1565 }
0x1cd4   :  { %v1568_v33 = vmul.f32 %v1566_v32, %v1561_v31 }
0x1cd6   :  { %1570 = vrot.lane.b32.xlu1 %v1568_v33, %s2748_s27 }
0x1d48   :  { %v1571_v36 = vpop.permute.xlu1 %1570 }
0x1d49   :  { %v1573_v38 = vadd.f32 %v1571_v36, %v1563_v34  ;;  %v1163_v36 = vadd.f32 %v3097_v61, %v3070_v8  ;;  %v1976_v8 = vld [vmem:[%s3212_s9] sm:$0xff]  ;;  %v1977_v61 = vld [vmem:[%s3212_s9 + $0x8] sm:$0xff] }
0x1d4b   :  { %2716 = vtanh.f32 %v1573_v38 }
0x1d55   :  { %v2717_v37 = vpop.eup %2716 }
0x1d56   :  { %1576 = vrot.lane.b32.xlu0 %v2717_v37, %s2747_s24 }
0x1dc8   :  { %v1577_v42 = vpop.permute.xlu0 %1576 }
0x1dc9   :  { %v1579_v63 = vmul.f32 %v1577_v42, %v1561_v31 }
0x1dcb   :  { %1582 = vrot.lane.b32.xlu1 %v1579_v63, %s2748_s27 }
0x1e3d   :  { %v1583_v43 = vpop.permute.xlu1 %1582 }
0x1e3e   :  { %2475 = vmatmul.mubr.msk.f32.vlgmr.msra.gmra.mrb[24].mxu0 %vm205_vm2, %v1583_v43 }
0x1e3f   :  { %2622 = vmatpush3.bf16.msra.mxu0 %v3027_v53  ;;  %2496 = vmatprep.mubr.msk.f32.mxu0 %vm2745_vm1, %v2746_v4 }
0x1e40   :  { %2623 = vmatprep.subr.bf16.mxu0 %v2744_v0 }
0x1e43   :  { %2625 = vmatpush3.bf16.msra.mxu0 %v3037_v56 }
0x1e44   :  { %2632 = vmatprep.subr.bf16.mxu0 %v2744_v0 }
0x1f11   :  { %v1652_v45 = vpop.f32.mrb[24].mxu0 }
0x1f12   :  { %v1656_v46 = vadd.f32 %v1652_v45, %v1148_v44  ;;  %v2476_v47 = vpop.f32.mrb[25].mxu0 }
0x1f14   :  { %2718 = vtanh.f32 %v1656_v46  ;;  %v1657_v49 = vmul.f32 0.5, %v1656_v46 }
0x1f16   :  { %2720 = vtanh.f32 %v1657_v49 }
0x1f1e   :  { %v2719_v48 = vpop.eup %2718 }
0x1f1f   :  { %1664 = vrot.lane.b32.xlu0 %v2719_v48, %s2747_s24 }
0x1f20   :  { %v2721_v50 = vpop.eup %2720 }
0x1f21   :  { %v1659_v51 = vadd.f32 1.0, %v2721_v50 }
0x1f23   :  { %v1660_v35 = vmul.f32 0.5, %v1659_v51  ;;  %v1978_v51 = vld [vmem:[%s3212_s9 + $0x10] sm:$0xff] }
0x1f25   :  { %v1662_v55 = vmul.f32 %v1660_v35, %v1573_v38 }
0x1f91   :  { %v1665_v52 = vpop.permute.xlu0 %1664 }
0x1f92   :  { %v1667_v54 = vmul.f32 %v1665_v52, %v1660_v35  ;;  %v1979_v52 = vld [vmem:[%s3212_s9 + $0x18] sm:$0xff] }
0x1f94   :  { %1669 = vrot.lane.b32.xlu1 %v1667_v54, %s2748_s27  ;;  %v2636_v54 = vpack.c.bf16 %v1979_v52, %v1978_v51 }
0x2006   :  { %v1670_v57 = vpop.permute.xlu1 %1669 }
0x2007   :  { %v1672_v58 = vadd.f32 %v1670_v57, %v1662_v55 }
0x2009   :  { %2722 = vtanh.f32 %v1672_v58 }
0x2013   :  { %v2723_v41 = vpop.eup %2722 }
0x2014   :  { %1675 = vrot.lane.b32.xlu0 %v2723_v41, %s2747_s24 }
0x2086   :  { %v1676_v59 = vpop.permute.xlu0 %1675 }
0x2087   :  { %v1678_v1 = vmul.f32 %v1676_v59, %v1660_v35  ;;  %v2633_v35 = vpack.c.bf16 %v1977_v61, %v1976_v8  ;;  %v2063_v59 = vld [vmem:[%s3213_s11] sm:$0xff] }
0x2089   :  { %1681 = vrot.lane.b32.xlu1 %v1678_v1, %s2748_s27  ;;  %v2064_v1 = vld [vmem:[%s3213_s11 + $0x8] sm:$0xff] }
0x20fb   :  { %v1682_v3 = vpop.permute.xlu1 %1681 }
0x20fc   :  { %2486 = vmatmul.mubr.msk.f32.vlgmr.msra.gmra.mrb[16].mxu1 %vm205_vm2, %v1682_v3  ;;  %v2187_v3 = vld [vmem:[%s3214_s10] ss:$0 sm:$0xff] }
0x20fd   :  { %2628 = vmatpush3.bf16.msra.mxu1 %v3027_v53  ;;  %2507 = vmatprep.mubr.msk.f32.mxu1 %vm2745_vm1, %v2746_v4 }
0x20fe   :  { %2629 = vmatprep.subr.bf16.mxu1 %v2744_v0 }
0x2101   :  { %2631 = vmatpush3.bf16.msra.mxu1 %v3037_v56 }
0x2102   :  { %2638 = vmatprep.subr.bf16.mxu1 %v2744_v0 }
0x21cf   :  { %v1751_v5 = vpop.f32.mrb[16].mxu1 }
0x21d0   :  { %v1755_v7 = vadd.f32 %v1751_v5, %v1153_v6  ;;  %v2487_v9 = vpop.f32.mrb[17].mxu1 }
0x21d2   :  { %2724 = vtanh.f32 %v1755_v7  ;;  %v1756_v53 = vmul.f32 0.5, %v1755_v7 }
0x21d4   :  { %2726 = vtanh.f32 %v1756_v53 }
0x21dc   :  { %v2725_v11 = vpop.eup %2724 }
0x21dd   :  { %1763 = vrot.lane.b32.xlu0 %v2725_v11, %s2747_s24  ;;  %v2189_v11 = vld [vmem:[%s3215_s12] ss:$0 sm:$0xff] }
0x21de   :  { %v2727_v12 = vpop.eup %2726 }
0x21df   :  { %v1758_v10 = vadd.f32 1.0, %v2727_v12 }
0x21e1   :  { %v1759_v14 = vmul.f32 0.5, %v1758_v10 }
0x21e3   :  { %v1761_v56 = vmul.f32 %v1759_v14, %v1672_v58 }
0x224f   :  { %v1764_v15 = vpop.permute.xlu0 %1763 }
0x2250   :  { %v1766_v13 = vmul.f32 %v1764_v15, %v1759_v14 }
0x2252   :  { %1768 = vrot.lane.b32.xlu1 %v1766_v13, %s2748_s27 }
0x22c4   :  { %v1769_v62 = vpop.permute.xlu1 %1768 }
0x22c5   :  { %v1771_v60 = vadd.f32 %v1769_v62, %v1761_v56 }
0x22c7   :  { %2728 = vtanh.f32 %v1771_v60 }
0x22d1   :  { %v2729_v40 = vpop.eup %2728 }
0x22d2   :  { %1774 = vrot.lane.b32.xlu0 %v2729_v40, %s2747_s24 }
0x2344   :  { %v1775_v16 = vpop.permute.xlu0 %1774 }
0x2345   :  { %v1777_v17 = vmul.f32 %v1775_v16, %v1759_v14 }
0x2347   :  { %1780 = vrot.lane.b32.xlu1 %v1777_v17, %s2748_s27 }
0x23b9   :  { %v1781_v18 = vpop.permute.xlu1 %1780 }
0x23ba   :  { %2497 = vmatmul.mubr.msk.f32.vlgmr.msra.gmra.mrb[26].mxu0 %vm205_vm2, %v1781_v18 }
0x23bb   :  { %2518 = vmatprep.mubr.msk.f32.mxu0 %vm2745_vm1, %v2746_v4  ;;  %2634 = vmatpush3.bf16.msra.mxu0 %v2633_v35 }
0x23bc   :  { %2635 = vmatprep.subr.bf16.mxu0 %v2744_v0  ;;  %v2639_v0 = vpack.c.bf16 %v2064_v1, %v2063_v59 }
0x23bf   :  { %2637 = vmatpush3.bf16.msra.mxu0 %v2636_v54 }
0x248d   :  { %v1850_v39 = vpop.f32.mrb[26].mxu0 }
0x248e   :  { %v1854_v20 = vadd.f32 %v1850_v39, %v1158_v19  ;;  %v2498_v21 = vpop.f32.mrb[27].mxu0 }
0x2490   :  { %2730 = vtanh.f32 %v1854_v20  ;;  %v1855_v23 = vmul.f32 0.5, %v1854_v20 }
0x2492   :  { %2732 = vtanh.f32 %v1855_v23 }
0x249a   :  { %v2731_v22 = vpop.eup %2730 }
0x249b   :  { %1862 = vrot.lane.b32.xlu0 %v2731_v22, %s2747_s24 }
0x249c   :  { %v2733_v24 = vpop.eup %2732 }
0x249d   :  { %v1857_v25 = vadd.f32 1.0, %v2733_v24 }
0x249f   :  { %v1858_v26 = vmul.f32 0.5, %v1857_v25 }
0x24a1   :  { %v1860_v29 = vmul.f32 %v1858_v26, %v1771_v60 }
0x250d   :  { %v1863_v27 = vpop.permute.xlu0 %1862 }
0x250e   :  { %v1865_v28 = vmul.f32 %v1863_v27, %v1858_v26 }
0x2510   :  { %1867 = vrot.lane.b32.xlu1 %v1865_v28, %s2748_s27 }
0x2582   :  { %v1868_v30 = vpop.permute.xlu1 %1867 }
0x2583   :  { %v1870_v31 = vadd.f32 %v1868_v30, %v1860_v29 }
0x2585   :  { %2734 = vtanh.f32 %v1870_v31 }
0x258f   :  { %v2735_v2 = vpop.eup %2734 }
0x2590   :  { %1873 = vrot.lane.b32.xlu0 %v2735_v2, %s2747_s24 }
0x2602   :  { %v1874_v32 = vpop.permute.xlu0 %1873 }
0x2603   :  { %v1876_v33 = vmul.f32 %v1874_v32, %v1858_v26 }
0x2605   :  { %1879 = vrot.lane.b32.xlu1 %v1876_v33, %s2748_s27 }
0x2677   :  { %v1880_v34 = vpop.permute.xlu1 %1879 }
0x2678   :  { %2508 = vmatmul.mubr.msk.f32.vlgmr.msra.gmra.mrb[18].mxu1 %vm205_vm2, %v1880_v34 }
0x2679   :  { %2525 = vmatprep.mubr.msk.f32.mxu1 %vm2745_vm1, %v2746_v4  ;;  %2640 = vmatpush3.bf16.msra.mxu1 %v2639_v0 }
0x274b   :  { %v1949_v38 = vpop.f32.mrb[18].mxu1 }
0x274c   :  { %v1953_v37 = vadd.f32 %v1949_v38, %v1163_v36  ;;  %v2509_v42 = vpop.f32.mrb[19].mxu1 }
0x274e   :  { %2736 = vtanh.f32 %v1953_v37  ;;  %v1954_v43 = vmul.f32 0.5, %v1953_v37 }
0x2750   :  { %2738 = vtanh.f32 %v1954_v43 }
0x2758   :  { %v2737_v63 = vpop.eup %2736 }
0x2759   :  { %1961 = vrot.lane.b32.xlu0 %v2737_v63, %s2747_s24 }
0x275a   :  { %v2739_v44 = vpop.eup %2738 }
0x275b   :  { %v1956_v45 = vadd.f32 1.0, %v2739_v44 }
0x275d   :  { %v1957_v46 = vmul.f32 0.5, %v1956_v45 }
0x275f   :  { %v1959_v4 = vmul.f32 %v1957_v46, %v1870_v31 }
0x27cb   :  { %v1962_v47 = vpop.permute.xlu0 %1961 }
0x27cc   :  { %v1964_v48 = vmul.f32 %v1962_v47, %v1957_v46 }
0x27ce   :  { %1966 = vrot.lane.b32.xlu1 %v1964_v48, %s2748_s27 }
0x2840   :  { %v1967_v49 = vpop.permute.xlu1 %1966 }
0x2841   :  { %v1969_v50 = vadd.f32 %v1967_v49, %v1959_v4 }
0x2843   :  { %2740 = vtanh.f32 %v1969_v50 }
0x284d   :  { %v2741_v55 = vpop.eup %2740 }
0x284e   :  { %1972 = vrot.lane.b32.xlu0 %v2741_v55, %s2747_s24 }
0x28c0   :  { %v1973_v57 = vpop.permute.xlu0 %1972 }
0x28c1   :  { %v1975_v58 = vmul.f32 %v1973_v57, %v1957_v46 }
0x28c3   :  { %1988 = vrot.lane.b32.xlu1 %v1975_v58, %s2748_s27 }
0x2935   :  { %v1989_v41 = vpop.permute.xlu1 %1988 }
0x2936   :  { %2519 = vmatmul.mubr.msk.f32.vlgmr.msra.gmra.mrb[28].mxu0 %vm205_vm2, %v1989_v41 }
0x2a09   :  { %v2058_v6 = vpop.f32.mrb[28].mxu0 }
0x2a0a   :  { %v2059_v5 = vadd.f32 %v2187_v3, %v2058_v6  ;;  %v2520_v7 = vpop.f32.mrb[29].mxu0 }
0x2a0c   :  { %2742 = vtanh.f32 %v2059_v5 }
0x2a16   :  { %v2743_v9 = vpop.eup %2742 }
0x2a17   :  { %2526 = vmatmul.mubr.msk.f32.vlgmr.msra.gmra.mrb[20].mxu1 %vm2072_vm3, %v2743_v9 }
0x2aea   :  { %v2142_v53 = vpop.f32.mrb[20].mxu1 }
0x2aeb   :  { %v2143_v12 = vadd.f32 %v2189_v11, %v2142_v53  ;;  %v2527_v10 = vpop.f32.mrb[21].mxu1 }
0x2aed   :  { %2146 = vst.msk [vmem:[%s3216_s13] sm:$0xff] %vm60_vm0, %v2143_v12 }

</bundles_post_ra>
